<compile_context>
chip_gen: v7x
topology: tpu7x:2x2x1
jax: 0.10.0
libtpu: 0.0.40
codegen_flags: <defaults>
</compile_context>

<pallas_src>
import functools
import math

import jax
import jax.numpy as jnp
from jax.experimental import pallas as pl
from jax.experimental.pallas import tpu as pltpu


# -----------------------------------------------------------------------------
# Generation-aware VMEM budget (v7x has only 64 MiB per TensorCore)
# -----------------------------------------------------------------------------

def _default_vmem_limit():
    try:
        cap = int(pltpu.get_tpu_info().vmem_capacity_bytes)
    except Exception:                          # unknown backend -> conservative
        cap = 64 * 1024 * 1024                 # v7x physical per-TC VMEM
    return max(32 * 1024 * 1024, min((cap * 3) // 4, 96 * 1024 * 1024))


_VMEM_LIMIT = _default_vmem_limit()


def _cparams(grid_rank):
    return pltpu.CompilerParams(
        dimension_semantics=("parallel",) * grid_rank,
        vmem_limit_bytes=_VMEM_LIMIT,
    )


# -----------------------------------------------------------------------------
# Pallas kernels
# -----------------------------------------------------------------------------

def _conv3x3_kernel(x_ref, w_ref, b_ref, o_ref, *, H, W, act):
    """x_ref: (1, H+2, W+2, Cin) zero-padded bf16; w_ref: (3,3,Cin,CoBlk) bf16;
    b_ref: (1, CoBlk) f32; o_ref: (1, H, W, CoBlk)."""
    x = x_ref[0]                                      # (H+2, W+2, Cin)
    cin = x.shape[-1]
    cout = o_ref.shape[-1]
    acc = jnp.zeros((H * W, cout), jnp.float32)
    for dx in range(3):
        xs = x[:, dx:dx + W, :]                       # one sublane shift per dx
        for dy in range(3):
            patch = xs[dy:dy + H].reshape(H * W, cin)  # leading-dim slice (cheap)
            acc = acc + jnp.dot(patch, w_ref[dy, dx],
                                preferred_element_type=jnp.float32)
    acc = acc + b_ref[...]
    if act == "relu":
        acc = jnp.maximum(acc, 0.0)
    elif act == "tanh":
        acc = jnp.tanh(acc)
    o_ref[0] = acc.reshape(H, W, cout).astype(o_ref.dtype)


def _dense_kernel(x_ref, w_ref, b_ref, o_ref, *, act):
    """im2col'd conv (or 1x1 conv): x_ref (1,H,W,K), w_ref (K,Cout), b (1,Cout)."""
    h, w, k = x_ref.shape[1], x_ref.shape[2], x_ref.shape[3]
    cout = o_ref.shape[-1]
    x = x_ref[0].reshape(h * w, k)
    acc = jnp.dot(x, w_ref[...], preferred_element_type=jnp.float32)
    acc = acc + b_ref[...]
    if act == "relu":
        acc = jnp.maximum(acc, 0.0)
    elif act == "tanh":
        acc = jnp.tanh(acc)
    o_ref[0] = acc.reshape(h, w, cout).astype(o_ref.dtype)


def _max4_kernel(a_ref, b_ref, c_ref, d_ref, o_ref):
    o_ref[...] = jnp.maximum(jnp.maximum(a_ref[...], b_ref[...]),
                             jnp.maximum(c_ref[...], d_ref[...]))


def _lerp_flat_kernel(x1_ref, x_ref, m_ref, o_ref):
    m = m_ref[...]                                    # lane-dense (1, H*W*C)
    o_ref[...] = x1_ref[...] * m + x_ref[...] * (1.0 - m)


def _haar_kernel(a_ref, b_ref, c_ref, d_ref, ll_ref, hl_ref, lh_ref, hh_ref):
    a, b, c, d = a_ref[...], b_ref[...], c_ref[...], d_ref[...]
    ll_ref[...] = (a + b + c + d) * 0.5
    hl_ref[...] = (a - b + c - d) * 0.5
    lh_ref[...] = (a + b - c - d) * 0.5
    hh_ref[...] = (a - b - c + d) * 0.5


def _masked_l1_nhwc_kernel(a_ref, b_ref, m_ref, o_ref):
    a = a_ref[...].astype(jnp.float32)
    b = b_ref[...].astype(jnp.float32)
    m = m_ref[...]                                    # (1,H,W,1) lane-broadcast
    o_ref[...] = jnp.sum(jnp.abs((a - b) * m), axis=(1, 2))   # (1,C) partials


def _masked_l1_flat_kernel(a_ref, b_ref, m_ref, o_ref):
    a = a_ref[...].astype(jnp.float32)                # (1, L) lane-dense
    b = b_ref[...].astype(jnp.float32)
    m = m_ref[...]
    o_ref[...] = jnp.sum(jnp.abs((a - b) * m), axis=1, keepdims=True)


def _gram_l1_kernel(a_ref, b_ref, m_ref, o_ref):
    """Row sums of |A^T A - B^T B| for masked features (fused style loss)."""
    c = a_ref.shape[-1]
    m = m_ref[0].astype(a_ref.dtype)                  # (h,w,1)
    fa = (a_ref[0] * m).reshape(-1, c)
    fb = (b_ref[0] * m).reshape(-1, c)
    dn = (((0,), (0,)), ((), ()))
    ga = jax.lax.dot_general(fa, fa, dn, preferred_element_type=jnp.float32)
    gb = jax.lax.dot_general(fb, fb, dn, preferred_element_type=jnp.float32)
    o_ref[...] = jnp.sum(jnp.abs(ga - gb), axis=0, keepdims=True)   # (1, C)


# -----------------------------------------------------------------------------
# Pallas wrappers (jit-cached per shape signature)
# -----------------------------------------------------------------------------

@functools.partial(jax.jit, static_argnames=("act", "out_dtype"))
def conv3x3(x, w, b, act="relu", out_dtype=jnp.bfloat16):
    """3x3 "same" conv, NHWC.  bf16 compute, f32 accumulation."""
    N, H, W_, Cin = x.shape
    Cout = w.shape[-1]
    xb = x.astype(jnp.bfloat16)
    wb = w.astype(jnp.bfloat16)
    b2 = b.astype(jnp.float32).reshape(1, Cout)
    # TODO(synk): wrapper-side halo pad (bf16); for large images tile rows with
    #             an in-kernel halo instead of padding the whole activation.
    xp = jnp.pad(xb, ((0, 0), (1, 1), (1, 1), (0, 0)))

    if Cin * 9 <= 128:
        # im2col path: fold the 9 taps into the contraction dim (K = 9*Cin) so
        # the MXU is not K-starved for 3/4-channel inputs (VGG layer 1, netG).
        cols = [xp[:, dy:dy + H, dx:dx + W_, :]
                for dy in range(3) for dx in range(3)]
        xcol = jnp.concatenate(cols, axis=-1)           # (N, H, W, 9*Cin)
        wcol = wb.reshape(9 * Cin, Cout)
        kern = functools.partial(_dense_kernel, act=act)
        return pl.pallas_call(
            kern,
            out_shape=jax.ShapeDtypeStruct((N, H, W_, Cout), out_dtype),
            grid=(N,),
            in_specs=[
                pl.BlockSpec((1, H, W_, 9 * Cin), lambda n: (n, 0, 0, 0)),
                pl.BlockSpec((9 * Cin, Cout), lambda n: (0, 0)),
                pl.BlockSpec((1, Cout), lambda n: (0, 0)),
            ],
            out_specs=pl.BlockSpec((1, H, W_, Cout), lambda n: (n, 0, 0, 0)),
            compiler_params=_cparams(1),
        )(xcol, wcol, b2)

    co_blk = Cout if Cout <= 256 else 256
    n_co = Cout // co_blk
    kern = functools.partial(_conv3x3_kernel, H=H, W=W_, act=act)
    return pl.pallas_call(
        kern,
        out_shape=jax.ShapeDtypeStruct((N, H, W_, Cout), out_dtype),
        grid=(N, n_co),
        in_specs=[
            pl.BlockSpec((1, H + 2, W_ + 2, Cin), lambda n, c: (n, 0, 0, 0)),
            pl.BlockSpec((3, 3, Cin, co_blk), lambda n, c: (0, 0, 0, c)),
            pl.BlockSpec((1, co_blk), lambda n, c: (0, c)),
        ],
        out_specs=pl.BlockSpec((1, H, W_, co_blk), lambda n, c: (n, 0, 0, c)),
        compiler_params=_cparams(2),
    )(xp, wb, b2)


@jax.jit
def maxpool2(x):
    # TODO(synk): polyphase decimation could be moved in-kernel to halve HBM reads.
    N, H, W, C = x.shape
    Ho, Wo = H // 2, W // 2
    a = x[:, 0::2, 0::2, :]
    b = x[:, 0::2, 1::2, :]
    c = x[:, 1::2, 0::2, :]
    d = x[:, 1::2, 1::2, :]
    spec = pl.BlockSpec((1, Ho, Wo, C), lambda n: (n, 0, 0, 0))
    return pl.pallas_call(
        _max4_kernel,
        out_shape=jax.ShapeDtypeStruct((N, Ho, Wo, C), x.dtype),
        grid=(N,),
        in_specs=[spec, spec, spec, spec],
        out_specs=spec,
        compiler_params=_cparams(1),
    )(a, b, c, d)


@jax.jit
def inpaint_composite(x1, x, m):
    """x1*m + x*(1-m), lane-dense: C=3 images are flattened to (N, H*W*C)."""
    N, H, W, C = x1.shape
    L = H * W * C
    mb = jnp.broadcast_to(m, (N, H, W, C)).reshape(N, L).astype(jnp.float32)
    spec = pl.BlockSpec((1, L), lambda n: (n, 0))
    out = pl.pallas_call(
        _lerp_flat_kernel,
        out_shape=jax.ShapeDtypeStruct((N, L), jnp.float32),
        grid=(N,),
        in_specs=[spec, spec, spec],
        out_specs=spec,
        compiler_params=_cparams(1),
    )(x1.astype(jnp.float32).reshape(N, L),
      x.astype(jnp.float32).reshape(N, L), mb)
    return out.reshape(N, H, W, C)


@jax.jit
def haar_dwt(x):
    """J=1 orthonormal Haar DWT, periodization mode. Returns LL, HL, LH, HH."""
    N, H, W, C = x.shape
    Ho, Wo = H // 2, W // 2
    a = x[:, 0::2, 0::2, :]
    b = x[:, 0::2, 1::2, :]
    c = x[:, 1::2, 0::2, :]
    d = x[:, 1::2, 1::2, :]
    spec = pl.BlockSpec((1, Ho, Wo, C), lambda n: (n, 0, 0, 0))
    shp = jax.ShapeDtypeStruct((N, Ho, Wo, C), jnp.float32)
    return pl.pallas_call(
        _haar_kernel,
        out_shape=(shp, shp, shp, shp),
        grid=(N,),
        in_specs=[spec, spec, spec, spec],
        out_specs=[spec, spec, spec, spec],
        compiler_params=_cparams(1),
    )(a.astype(jnp.float32), b.astype(jnp.float32),
      c.astype(jnp.float32), d.astype(jnp.float32))


@jax.jit
def masked_l1(a, b, m):
    """mean(|a*m - b*m|) over all elements of a; m is (N,H,W,1)."""
    N, H, W, C = a.shape
    denom = float(N * H * W * C)
    if C < 64:
        # lane-dense path for 3-channel images / DWT bands: flatten to (N, H*W*C)
        L = H * W * C
        mb = jnp.broadcast_to(m, (N, H, W, C)).reshape(N, L).astype(jnp.float32)
        spec = pl.BlockSpec((1, L), lambda n: (n, 0))
        part = pl.pallas_call(
            _masked_l1_flat_kernel,
            out_shape=jax.ShapeDtypeStruct((N, 1), jnp.float32),
            grid=(N,),
            in_specs=[spec, spec, spec],
            out_specs=pl.BlockSpec((1, 1), lambda n: (n, 0)),
            compiler_params=_cparams(1),
        )(a.reshape(N, L), b.reshape(N, L), mb)
    else:
        mh, mw = m.shape[1], m.shape[2]
        part = pl.pallas_call(
            _masked_l1_nhwc_kernel,
            out_shape=jax.ShapeDtypeStruct((N, C), jnp.float32),
            grid=(N,),
            in_specs=[
                pl.BlockSpec((1, H, W, C), lambda n: (n, 0, 0, 0)),
                pl.BlockSpec((1, H, W, C), lambda n: (n, 0, 0, 0)),
                pl.BlockSpec((1, mh, mw, 1), lambda n: (n, 0, 0, 0)),
            ],
            out_specs=pl.BlockSpec((1, C), lambda n: (n, 0)),
            compiler_params=_cparams(1),
        )(a, b, m.astype(jnp.float32))
    return jnp.sum(part) / denom


@jax.jit
def gram_l1(fa, fb, m):
    """Fused style loss term: mean(|Gram(fa*m) - Gram(fb*m)|) with
    Gram(X) = reshape(X, HW x C)^T reshape(X, HW x C) / (H*W*C)."""
    N, h, w, C = fa.shape
    rows = pl.pallas_call(
        _gram_l1_kernel,
        out_shape=jax.ShapeDtypeStruct((N, C), jnp.float32),
        grid=(N,),
        in_specs=[
            pl.BlockSpec((1, h, w, C), lambda n: (n, 0, 0, 0)),
            pl.BlockSpec((1, h, w, C), lambda n: (n, 0, 0, 0)),
            pl.BlockSpec((1, h, w, 1), lambda n: (n, 0, 0, 0)),
        ],
        out_specs=pl.BlockSpec((1, C), lambda n: (n, 0)),
        compiler_params=_cparams(1),
    )(fa, fb, m.astype(jnp.float32))
    return jnp.sum(rows) / float(h * w * C) / float(N * C * C)


# -----------------------------------------------------------------------------
# VGG19 feature extractor (torchvision layout), built from the Pallas conv kernel
# -----------------------------------------------------------------------------

VGG_LAYERS = [                     # (name, cin, cout, maxpool_before)
    ("relu1_1", 3, 64, False), ("relu1_2", 64, 64, False),
    ("relu2_1", 64, 128, True), ("relu2_2", 128, 128, False),
    ("relu3_1", 128, 256, True), ("relu3_2", 256, 256, False),
    ("relu3_3", 256, 256, False), ("relu3_4", 256, 256, False),
    ("relu4_1", 256, 512, True), ("relu4_2", 512, 512, False),
    ("relu4_3", 512, 512, False), ("relu4_4", 512, 512, False),
    ("relu5_1", 512, 512, True), ("relu5_2", 512, 512, False),
    ("relu5_3", 512, 512, False), ("relu5_4", 512, 512, False),
]


def vgg19_forward(vgg_params, x_nhwc):
    out = {}
    h = x_nhwc
    for (name, _, _, pool_before), (w, b) in zip(VGG_LAYERS, vgg_params):
        if pool_before:
            h = maxpool2(h)
        h = conv3x3(h, w, b, act="relu", out_dtype=jnp.bfloat16)
        out[name] = h
    return out


# -----------------------------------------------------------------------------
# Plain-JAX glue: discriminators, gradient penalty, resize, local_patch
# -----------------------------------------------------------------------------

def disc_forward(p, x_nhwc):
    # TODO(synk): exact LocalDis/GlobalDis architectures unavailable; small stub
    #             kept in plain JAX so jax.grad can compute the WGAN-GP penalty.
    dn = ("NHWC", "HWIO", "NHWC")
    h = jax.lax.conv_general_dilated(x_nhwc, p["w1"], (2, 2), "SAME",
                                     dimension_numbers=dn) + p["b1"]
    h = jax.nn.leaky_relu(h, 0.2)
    h = jax.lax.conv_general_dilated(h, p["w2"], (2, 2), "SAME",
                                     dimension_numbers=dn) + p["b2"]
    h = jax.nn.leaky_relu(h, 0.2)
    h = jnp.mean(h, axis=(1, 2))
    return h @ p["wl"] + p["bl"]                      # (N, 1)


def dis_forward(p, ground_truth, x_inpaint):
    assert ground_truth.shape == x_inpaint.shape
    bs = ground_truth.shape[0]
    batch = jnp.concatenate([ground_truth, x_inpaint], axis=0)
    out = disc_forward(p, batch)
    return out[:bs], out[bs:]


def calc_gradient_penalty(p, real, fake, key):
    bs = real.shape[0]
    alpha = jax.random.uniform(key, (bs, 1, 1, 1), dtype=real.dtype)
    interp = alpha * real + (1.0 - alpha) * fake
    grads = jax.grad(lambda z: jnp.sum(disc_forward(p, z)))(interp)
    gnorm = jnp.sqrt(jnp.sum(jnp.reshape(grads, (bs, -1)) ** 2, axis=1))
    return jnp.mean((gnorm - 1.0) ** 2)


def resize_bilinear_align_corners(x_nhwc, out_h, out_w):
    N, H, W, C = x_nhwc.shape

    def coords(n_out, n_in):
        if n_out == 1:
            return jnp.zeros((1,), jnp.float32)
        return jnp.linspace(0.0, n_in - 1.0, n_out)

    ys, xs = coords(out_h, H), coords(out_w, W)
    y0 = jnp.floor(ys).astype(jnp.int32)
    x0 = jnp.floor(xs).astype(jnp.int32)
    y1 = jnp.clip(y0 + 1, 0, H - 1)
    x1 = jnp.clip(x0 + 1, 0, W - 1)
    wy = (ys - y0.astype(jnp.float32))[None, :, None, None]
    wx = (xs - x0.astype(jnp.float32))[None, None, :, None]
    g = lambda yi, xi: x_nhwc[:, yi][:, :, xi]        # (N,out_h,out_w,C)
    top = g(y0, x0) * (1 - wx) + g(y0, x1) * wx
    bot = g(y1, x0) * (1 - wx) + g(y1, x1) * wx
    return top * (1 - wy) + bot * wy


def local_patch(x_nhwc, bboxes, ph, pw):
    def one(xi, tl):
        return jax.lax.dynamic_slice(xi, (tl[0], tl[1], 0), (ph, pw, xi.shape[-1]))
    return jax.vmap(one)(x_nhwc, bboxes[:, :2])


# -----------------------------------------------------------------------------
# Trainer forward
# -----------------------------------------------------------------------------

def trainer_forward(params, x, bboxes, masks, ground_truth, sdm, key,
                    compute_loss_g=True):
    """Inputs are NCHW (PyTorch convention); kernels run NHWC internally."""
    cfg = params["config"]
    to_nhwc = lambda t: jnp.transpose(t, (0, 2, 3, 1)).astype(jnp.float32)
    x_, m_, gt_, sdm_ = map(to_nhwc, (x, masks, ground_truth, sdm))
    N, H, W, _ = x_.shape
    losses = {}

    # ---- generator stub (netG): Pallas im2col conv3x3 + tanh over [x, mask] --
    gen_in = jnp.concatenate([x_, m_], axis=-1)
    x1 = conv3x3(gen_in, params["gen"]["w"], params["gen"]["b"],
                 act="tanh", out_dtype=jnp.float32)
    LL_dx, HL_dx, LH_dx, HH_dx = haar_dwt(x1)         # generator wavelet outputs (stub)

    # ---- DWT of ground truth (Pallas Haar kernel) ----------------------------
    LL_gt, HL_gt, LH_gt, HH_gt = haar_dwt(gt_)

    # ---- spatial discounting masks at 1/2, 1/4, 1/8, 1/16 --------------------
    sdm_2 = resize_bilinear_align_corners(sdm_, H // 2, W // 2)
    sdm_4 = resize_bilinear_align_corners(sdm_, H // 4, W // 4)
    sdm_8 = resize_bilinear_align_corners(sdm_, H // 8, W // 8)
    sdm_16 = resize_bilinear_align_corners(sdm_, H // 16, W // 16)

    # static patch size (avoids a device->host sync on bboxes mid-trace)
    ph, pw = cfg["patch_hw"]
    local_patch_gt = local_patch(gt_, bboxes, ph, pw)

    # ---- inpaint compositing (Pallas, lane-dense) -----------------------------
    x1_inpaint = inpaint_composite(x1, x_, m_)
    local_patch_x1 = local_patch(x1_inpaint, bboxes, ph, pw)

    # ---- VGG features (Pallas conv/maxpool, bf16) ------------------------------
    x1_vgg = vgg19_forward(params["vgg"], (x1_inpaint + 1.0) / 2.0)
    gt_vgg = vgg19_forward(params["vgg"], (gt_ + 1.0) / 2.0)

    # ---- discriminator losses --------------------------------------------------
    sg = jax.lax.stop_gradient
    lr, lf = dis_forward(params["localD"], local_patch_gt, sg(local_patch_x1))
    gr, gf = dis_forward(params["globalD"], gt_, sg(x1_inpaint))
    losses["wgan_d"] = (jnp.mean(lf - lr)
                        + jnp.mean(gf - gr) * cfg["global_wgan_loss_alpha"])

    k1, k2 = jax.random.split(key)
    losses["wgan_gp"] = (
        calc_gradient_penalty(params["localD"], local_patch_gt, sg(local_patch_x1), k1)
        + calc_gradient_penalty(params["globalD"], gt_, sg(x1_inpaint), k2))

    if compute_loss_g:
        losses["Context"] = masked_l1(x1_inpaint, gt_, sdm_)
        losses["DWT"] = (masked_l1(LL_dx, LL_gt, sdm_2)
                         + masked_l1(HL_dx, HL_gt, sdm_2)
                         + masked_l1(LH_dx, LH_gt, sdm_2)
                         + masked_l1(HH_dx, HH_gt, sdm_2))
        losses["Perceptual"] = (
            masked_l1(x1_vgg["relu1_1"], gt_vgg["relu1_1"], sdm_)
            + masked_l1(x1_vgg["relu2_1"], gt_vgg["relu2_1"], sdm_2)
            + masked_l1(x1_vgg["relu3_1"], gt_vgg["relu3_1"], sdm_4)
            + masked_l1(x1_vgg["relu4_1"], gt_vgg["relu4_1"], sdm_8)
            + masked_l1(x1_vgg["relu5_1"], gt_vgg["relu5_1"], sdm_16))

        # fused style loss: one Pallas kernel per layer computes |Gram-Gram|
        losses["Style"] = (
            gram_l1(x1_vgg["relu2_2"], gt_vgg["relu2_2"], sdm_2)
            + gram_l1(x1_vgg["relu3_4"], gt_vgg["relu3_4"], sdm_4)
            + gram_l1(x1_vgg["relu4_4"], gt_vgg["relu4_4"], sdm_8)
            + gram_l1(x1_vgg["relu5_2"], gt_vgg["relu5_2"], sdm_16))

        lr2, lf2 = dis_forward(params["localD"], local_patch_gt, local_patch_x1)
        gr2, gf2 = dis_forward(params["globalD"], gt_, x1_inpaint)
        losses["wgan_g"] = (-jnp.mean(lf2)
                            - jnp.mean(gf2) * cfg["global_wgan_loss_alpha"])

    return losses, jnp.transpose(x1_inpaint, (0, 3, 1, 2))   # back to NCHW


# -----------------------------------------------------------------------------
# Deterministic parameter initialization
# -----------------------------------------------------------------------------

def init_trainer_params(key, patch_hw=(16, 16)):
    keys = iter(jax.random.split(key, 64))
    params = {"config": {"global_wgan_loss_alpha": 1.0, "patch_hw": patch_hw}}

    vgg = []
    for (_, cin, cout, _) in VGG_LAYERS:
        w = (jax.random.normal(next(keys), (3, 3, cin, cout), jnp.float32)
             * math.sqrt(2.0 / (9 * cin))).astype(jnp.bfloat16)   # bf16 storage
        vgg.append((w, jnp.zeros((cout,), jnp.float32)))
    params["vgg"] = vgg

    params["gen"] = {
        "w": jax.random.normal(next(keys), (3, 3, 4, 3),
                               jnp.float32) * math.sqrt(2.0 / (9 * 4)),
        "b": jnp.zeros((3,), jnp.float32),
    }

    def disc_params():
        cnum = 32
        return {
            "w1": jax.random.normal(next(keys), (5, 5, 3, cnum), jnp.float32) * 0.05,
            "b1": jnp.zeros((cnum,), jnp.float32),
            "w2": jax.random.normal(next(keys), (5, 5, cnum, 2 * cnum), jnp.float32) * 0.05,
            "b2": jnp.zeros((2 * cnum,), jnp.float32),
            "wl": jax.random.normal(next(keys), (2 * cnum, 1), jnp.float32) * 0.05,
            "bl": jnp.zeros((1,), jnp.float32),
        }

    params["localD"] = disc_params()
    params["globalD"] = disc_params()
    return params


# -----------------------------------------------------------------------------
if __name__ == "__main__":
    key = jax.random.PRNGKey(0)
    kp, kx, kg, ks, kgp = jax.random.split(key, 5)
    params = init_trainer_params(kp, patch_hw=(16, 16))

    N, C, H, W = 2, 3, 32, 32
    x = jax.random.uniform(kx, (N, C, H, W), minval=-1.0, maxval=1.0)
    ground_truth = jax.random.uniform(kg, (N, C, H, W), minval=-1.0, maxval=1.0)
    masks = jnp.zeros((N, 1, H, W), jnp.float32).at[:, :, 8:24, 8:24].set(1.0)
    sdm = jax.random.uniform(ks, (N, 1, H, W))
    bboxes = jnp.array([[8, 8, 16, 16], [8, 8, 16, 16]], jnp.int32)

    losses, x1_inpaint = trainer_forward(params, x, bboxes, masks, ground_truth,
                                         sdm, kgp, compute_loss_g=True)
    jax.block_until_ready((losses, x1_inpaint))
    assert x1_inpaint.shape == (N, C, H, W)
    print("KERNEL_OK")
</pallas_src>

<mosaic_0001>
module attributes {stable_mosaic.version = 11 : i64} {
  func.func @_dense_kernel(%arg0: i32, %arg1: memref<1x32x32x36xbf16, #tpu.memory_space<vmem>>, %arg2: memref<36x3xbf16, #tpu.memory_space<vmem>>, %arg3: memref<1x3xf32, #tpu.memory_space<vmem>>, %arg4: memref<1x32x32x3xf32, #tpu.memory_space<vmem>>) attributes {dimension_semantics = [#tpu.dimension_semantics<parallel>], iteration_bounds = array<i64: 2>, scalar_prefetch = 0 : i64, scratch_operands = 0 : i64, tpu.core_type = #tpu.core_type<tc>, window_params = [{transform_indices = @transform_0, window_bounds = array<i64: 1, 32, 32, 36>}, {pipeline_mode = #tpu.pipeline_mode<synchronous>, transform_indices = @transform_1, window_bounds = array<i64: 36, 3>}, {pipeline_mode = #tpu.pipeline_mode<synchronous>, transform_indices = @transform_2, window_bounds = array<i64: 1, 3>}, {transform_indices = @transform_3, window_bounds = array<i64: 1, 32, 32, 3>}]} {
    %c0 = arith.constant 0 : index
    %c0_0 = arith.constant 0 : index
    %c0_1 = arith.constant 0 : index
    %c0_2 = arith.constant 0 : index
    %0 = vector.load %arg1[%c0, %c0_0, %c0_1, %c0_2] : memref<1x32x32x36xbf16, #tpu.memory_space<vmem>>, vector<1x32x32x36xbf16>
    %1 = vector.shape_cast %0 : vector<1x32x32x36xbf16> to vector<32x32x36xbf16>
    %2 = vector.shape_cast %1 : vector<32x32x36xbf16> to vector<1024x36xbf16>
    %c0_3 = arith.constant 0 : index
    %c0_4 = arith.constant 0 : index
    %3 = vector.load %arg2[%c0_3, %c0_4] : memref<36x3xbf16, #tpu.memory_space<vmem>>, vector<36x3xbf16>
    %cst = arith.constant dense<0.000000e+00> : vector<1024x3xf32>
    %4 = tpu.matmul %2, %3, %cst {dimension_numbers = #tpu.dot_dimension_numbers<[1], [0], [0], [1], [0, 0, 1, 1], [], []>} : vector<1024x36xbf16>, vector<36x3xbf16>, vector<1024x3xf32> -> vector<1024x3xf32>
    %c0_5 = arith.constant 0 : index
    %c0_6 = arith.constant 0 : index
    %5 = vector.load %arg3[%c0_5, %c0_6] : memref<1x3xf32, #tpu.memory_space<vmem>>, vector<1x3xf32>
    %6 = vector.broadcast %5 : vector<1x3xf32> to vector<1024x3xf32>
    %7 = arith.addf %4, %6 : vector<1024x3xf32>
    %8 = math.tanh %7 : vector<1024x3xf32>
    %9 = vector.shape_cast %8 : vector<1024x3xf32> to vector<32x32x3xf32>
    %c0_7 = arith.constant 0 : index
    %c0_8 = arith.constant 0 : index
    %c0_9 = arith.constant 0 : index
    %c0_10 = arith.constant 0 : index
    %10 = vector.load %arg4[%c0_7, %c0_8, %c0_9, %c0_10] : memref<1x32x32x3xf32, #tpu.memory_space<vmem>>, vector<1x32x32x3xf32>
    %11 = vector.shape_cast %10 : vector<1x32x32x3xf32> to vector<32x32x3xf32>
    %12 = vector.shape_cast %9 : vector<32x32x3xf32> to vector<1x32x32x3xf32>
    tpu.vector_store %arg4[%c0_7, %c0_8, %c0_9, %c0_10], %12 {strides = array<i32>} : memref<1x32x32x3xf32, #tpu.memory_space<vmem>>, vector<1x32x32x3xf32>,
    return
  }
  func.func @transform_0(%arg0: i32) -> (i32, i32, i32, i32) {
    %c0_i32 = arith.constant 0 : i32
    %c0_i32_0 = arith.constant 0 : i32
    %c0_i32_1 = arith.constant 0 : i32
    %c0_i32_2 = arith.constant 0 : i32
    return %arg0, %c0_i32, %c0_i32_0, %c0_i32_1 : i32, i32, i32, i32
  }
  func.func @transform_1(%arg0: i32) -> (i32, i32) {
    %c0_i32 = arith.constant 0 : i32
    %c0_i32_0 = arith.constant 0 : i32
    %c0_i32_1 = arith.constant 0 : i32
    return %c0_i32, %c0_i32_0 : i32, i32
  }
  func.func @transform_2(%arg0: i32) -> (i32, i32) {
    %c0_i32 = arith.constant 0 : i32
    %c0_i32_0 = arith.constant 0 : i32
    %c0_i32_1 = arith.constant 0 : i32
    return %c0_i32, %c0_i32_0 : i32, i32
  }
  func.func @transform_3(%arg0: i32) -> (i32, i32, i32, i32) {
    %c0_i32 = arith.constant 0 : i32
    %c0_i32_0 = arith.constant 0 : i32
    %c0_i32_1 = arith.constant 0 : i32
    %c0_i32_2 = arith.constant 0 : i32
    return %arg0, %c0_i32, %c0_i32_0, %c0_i32_1 : i32, i32, i32, i32
  }
}

</mosaic_0001>

<bundles_post_ra>
// kernel: conv3x3.1
= control target key start
LH: loop header
LB: loop body
LE: loop exit
PB: predicated region body
PF: predicated region fallthrough
CT: control target
= control target key end

     0   :  { %s2415_s12 = smov 0   ;;  %s2971_s0 = inlined_call_operand.vmem [shape: bf16[2,32,32,36], index: 0, kind: input, shape index: {}]   ;;  %s2972_s1 = inlined_call_operand.vmem [shape: bf16[36,3], index: 1, kind: input, shape index: {}]   ;;  %s2973_s2 = inlined_call_operand.vmem [shape: f32[1,3], index: 2, kind: input, shape index: {}]   ;;  %s2974_s3 = inlined_call_operand.vmem [shape: f32[2,32,32,3], index: 3, kind: output, shape index: {}]  }
   0x1 LB: > { %s1701_s13 = sadd.s32 4294967295, %s2393_s12   ;;  %p1705_p0 = scmp.ge.s32.totalorder %s2393_s12, 1  ;;  %s2393_s12 = sphi %s2415_s12, %s13_s12  }
   0x2   : > { %p137_p1 = scmp.lt.s32.totalorder %s2393_s12, 3 }
   0x4   : > { %p138_p2 = pnand %p1705_p0, %p137_p1 }
   0x5   : > { %v2063_v0 = vld [vmem:[%s2972_s1] sm:$0xff] (!%p138_p2)   ;;  %v2064_v1 = vld [vmem:[%s2972_s1 + $0x8] sm:$0xff] (!%p138_p2)   ;;  %p161_p3 = scmp.lt.s32.totalorder (!%p138_p2), %s1701_s13, 1  ;;  %v2065_v2 = vld [vmem:[%s2972_s1 + $0x10] ss:$0 sps:$4 sm:$0x33] (!%p138_p2)  }
   0x6   : > { %141 = sbr.rel (%p138_p2) target bundleno = 374 (0x176), region = 32  ;;  %1913 = vmatprep.subr.bf16.mxu0 (!%p138_p2), %v2063_v0  ;;  %2047 = vmatprep.subr.bf16.mxu1 (!%p138_p2), %v2063_v0  ;;  %vm840_vm0 = vcmask (!%p138_p2), 1041408   ;;  %vm647_vm1 = vcmask (!%p138_p2), 293888   ;;  %vm1517_vm2 = vcmask (!%p138_p2), 23552  }
   0x7   : > { %1914 = vmatpush3.bf16.msra.mxu0 (!%p138_p2), %v2063_v0  ;;  %2050 = vmatpush3.bf16.msra.mxu1 (!%p138_p2), %v2063_v0  ;;  %v842_v4 = vsel (!%p138_p2), %vm840_vm0, %v2065_v2, 0 }
   0x8   : > { %1915 = vmatprep.subr.bf16.mxu0 (!%p138_p2), %v2064_v1  ;;  %2048 = vmatprep.subr.bf16.mxu1 (!%p138_p2), %v2064_v1 }
   0xb   : > { %1916 = vmatpush3.bf16.msra.mxu0 (!%p138_p2), %v2064_v1  ;;  %2051 = vmatpush3.bf16.msra.mxu1 (!%p138_p2), %v2064_v1 }
   0xc   : > { %2053 = vmatprep.subr.msk.bf16.mxu0 (!%p138_p2), %vm840_vm0, %v2065_v2  ;;  %2054 = vmatprep.subr.msk.bf16.mxu1 (!%p138_p2), %vm840_vm0, %v2065_v2 }
   0xd   : > { %s2976_s13 = smov (!%p161_p3, %s1701_s13), 1 }
   0xe   : > { %s1844_s20 = sshll.u32 %s2976_s13, 9  ;;  %s1845_s26 = sshll.u32 %s2976_s13, 10 }
   0xf   : > { %s2438_s23 = scalar_lea.vmem %s2971_s0, %s1844_s20  ;;  %1918 = vmatpush3.bf16.msra.mxu0 %v842_v4  ;;  %2052 = vmatpush3.bf16.msra.mxu1 %v842_v4  ;;  %v2571_v4 = vld [vmem:[%s2973_s2] ss:$0 sm:$0xff]  ;;  %s2589_s29 = scalar_lea.vmem %s2974_s3, %s1845_s26 }
  0x10   : > { %v2066_v3 = vld [vmem:[%s2438_s23] sm:$0xff]   ;;  %v2068_v6 = vld [vmem:[%s2438_s23 + $0x8] sm:$0xff]   ;;  %v2070_v8 = vld [vmem:[%s2438_s23 + $0x10] sm:$0xff]  }
  0x11   : > { %v2067_v5 = vld [vmem:[%s2438_s23 + $0x100] sm:$0xff]   ;;  %1919 = vmatprep.mubr.msk.bf16.mxu0 %vm647_vm1, %v2066_v3  ;;  %v2069_v7 = vld [vmem:[%s2438_s23 + $0x108] sm:$0xff]   ;;  %v2071_v9 = vld [vmem:[%s2438_s23 + $0x110] sm:$0xff]  }
  0x12   : > { %1983 = vmatprep.mubr.msk.bf16.mxu1 %vm647_vm1, %v2067_v5  ;;  %1920 = vmatmul.mubr.msk.bf16.vlgmr.msra.gmra.mrb[0].mxu0 %vm647_vm1, %v2068_v6  ;;  %v2072_v10 = vld [vmem:[%s2438_s23 + $0x18] sm:$0xff]   ;;  %v2074_v12 = vld [vmem:[%s2438_s23 + $0x20] sm:$0xff]   ;;  %v2076_v14 = vld [vmem:[%s2438_s23 + $0x28] sm:$0xff]  }
  0x13   : > { %1984 = vmatmul.mubr.msk.bf16.vlgmr.msra.gmra.mrb[0].mxu1 %vm647_vm1, %v2069_v7  ;;  %1923 = vmatprep.mubr.msk.bf16.mxu0 %vm647_vm1, %v2070_v8  ;;  %v2073_v11 = vld [vmem:[%s2438_s23 + $0x118] sm:$0xff]   ;;  %v2075_v13 = vld [vmem:[%s2438_s23 + $0x120] sm:$0xff]   ;;  %v2077_v15 = vld [vmem:[%s2438_s23 + $0x128] sm:$0xff]  }
  0x14   : > { %1987 = vmatprep.mubr.msk.bf16.mxu1 %vm647_vm1, %v2071_v9  ;;  %v2078_v16 = vld [vmem:[%s2438_s23 + $0x30] sm:$0xff]   ;;  %v2080_v18 = vld [vmem:[%s2438_s23 + $0x38] sm:$0xff]   ;;  %v2082_v20 = vld [vmem:[%s2438_s23 + $0x40] sm:$0xff]  }
  0x15   : > { %v2079_v17 = vld [vmem:[%s2438_s23 + $0x130] sm:$0xff]   ;;  %v2081_v19 = vld [vmem:[%s2438_s23 + $0x138] sm:$0xff]   ;;  %v2083_v21 = vld [vmem:[%s2438_s23 + $0x140] sm:$0xff]  }
  0x16   : > { %v2084_v22 = vld [vmem:[%s2438_s23 + $0x48] sm:$0xff]   ;;  %v2086_v24 = vld [vmem:[%s2438_s23 + $0x50] sm:$0xff]   ;;  %v2088_v26 = vld [vmem:[%s2438_s23 + $0x58] sm:$0xff]  }
  0x17   : > { %v2085_v23 = vld [vmem:[%s2438_s23 + $0x148] sm:$0xff]   ;;  %v2087_v25 = vld [vmem:[%s2438_s23 + $0x150] sm:$0xff]   ;;  %v2089_v27 = vld [vmem:[%s2438_s23 + $0x158] sm:$0xff]  }
  0x18   : > { %v2090_v28 = vld [vmem:[%s2438_s23 + $0x60] sm:$0xff]   ;;  %v2092_v30 = vld [vmem:[%s2438_s23 + $0x68] sm:$0xff]   ;;  %v2094_v32 = vld [vmem:[%s2438_s23 + $0x70] sm:$0xff]  }
  0x19   : > { %v2091_v29 = vld [vmem:[%s2438_s23 + $0x160] sm:$0xff]   ;;  %v2093_v31 = vld [vmem:[%s2438_s23 + $0x168] sm:$0xff]   ;;  %v2095_v33 = vld [vmem:[%s2438_s23 + $0x170] sm:$0xff]  }
  0x1a   : > { %1924 = vmatmul.mubr.msk.bf16.gmra.mrb[4].mxu0 %vm647_vm1, %v2072_v10  ;;  %v2096_v34 = vld [vmem:[%s2438_s23 + $0x78] sm:$0xff]   ;;  %v2098_v36 = vld [vmem:[%s2438_s23 + $0x80] sm:$0xff]   ;;  %v2100_v38 = vld [vmem:[%s2438_s23 + $0x88] sm:$0xff]  }
  0x1b   : > { %1988 = vmatmul.mubr.msk.bf16.gmra.mrb[4].mxu1 %vm647_vm1, %v2073_v11  ;;  %1927 = vmatprep.mubr.msk.bf16.mxu0 %vm647_vm1, %v2074_v12  ;;  %v2097_v35 = vld [vmem:[%s2438_s23 + $0x178] sm:$0xff]   ;;  %v2099_v37 = vld [vmem:[%s2438_s23 + $0x180] sm:$0xff]   ;;  %v2101_v39 = vld [vmem:[%s2438_s23 + $0x188] sm:$0xff]  }
  0x1c   : > { %1991 = vmatprep.mubr.msk.bf16.mxu1 %vm647_vm1, %v2075_v13  ;;  %v2102_v40 = vld [vmem:[%s2438_s23 + $0x90] sm:$0xff]   ;;  %v2104_v42 = vld [vmem:[%s2438_s23 + $0x98] sm:$0xff]   ;;  %v2106_v44 = vld [vmem:[%s2438_s23 + $0xa0] sm:$0xff]  }
  0x1d   : > { %v2103_v41 = vld [vmem:[%s2438_s23 + $0x190] sm:$0xff]   ;;  %v2105_v43 = vld [vmem:[%s2438_s23 + $0x198] sm:$0xff]   ;;  %v2107_v45 = vld [vmem:[%s2438_s23 + $0x1a0] sm:$0xff]  }
  0x1e   : > { %v2108_v46 = vld [vmem:[%s2438_s23 + $0xa8] sm:$0xff]   ;;  %v2110_v48 = vld [vmem:[%s2438_s23 + $0xb0] sm:$0xff]   ;;  %v2112_v50 = vld [vmem:[%s2438_s23 + $0xb8] sm:$0xff]  }
  0x1f   : > { %v2109_v47 = vld [vmem:[%s2438_s23 + $0x1a8] sm:$0xff]   ;;  %v2111_v49 = vld [vmem:[%s2438_s23 + $0x1b0] sm:$0xff]   ;;  %v2113_v51 = vld [vmem:[%s2438_s23 + $0x1b8] sm:$0xff]  }
  0x20   : > { %v2114_v52 = vld [vmem:[%s2438_s23 + $0xc0] sm:$0xff]   ;;  %v2116_v54 = vld [vmem:[%s2438_s23 + $0xc8] sm:$0xff]   ;;  %v2118_v56 = vld [vmem:[%s2438_s23 + $0xd0] sm:$0xff]  }
  0x21   : > { %v2115_v53 = vld [vmem:[%s2438_s23 + $0x1c0] sm:$0xff]   ;;  %v2117_v55 = vld [vmem:[%s2438_s23 + $0x1c8] sm:$0xff]   ;;  %v2119_v57 = vld [vmem:[%s2438_s23 + $0x1d0] sm:$0xff]  }
  0x22   : > { %1928 = vmatmul.mubr.msk.bf16.gmra.mrb[8].mxu0 %vm647_vm1, %v2076_v14  ;;  %v2120_v58 = vld [vmem:[%s2438_s23 + $0xd8] sm:$0xff]   ;;  %v2122_v60 = vld [vmem:[%s2438_s23 + $0xe0] sm:$0xff]   ;;  %v2124_v62 = vld [vmem:[%s2438_s23 + $0xe8] sm:$0xff]  }
  0x23   : > { %1992 = vmatmul.mubr.msk.bf16.gmra.mrb[8].mxu1 %vm647_vm1, %v2077_v15  ;;  %1931 = vmatprep.mubr.msk.bf16.mxu0 %vm647_vm1, %v2078_v16  ;;  %v2121_v59 = vld [vmem:[%s2438_s23 + $0x1d8] sm:$0xff]   ;;  %v2123_v61 = vld [vmem:[%s2438_s23 + $0x1e0] sm:$0xff]   ;;  %v2125_v63 = vld [vmem:[%s2438_s23 + $0x1e8] sm:$0xff]  }
  0x24   : > { %1995 = vmatprep.mubr.msk.bf16.mxu1 %vm647_vm1, %v2079_v17  ;;  %v2126_v0 = vld [vmem:[%s2438_s23 + $0xf0] sm:$0xff]   ;;  %v2128_v2 = vld [vmem:[%s2438_s23 + $0xf8] sm:$0xff]  }
  0x25   : > { %v2127_v1 = vld [vmem:[%s2438_s23 + $0x1f0] sm:$0xff]   ;;  %v2129_v3 = vld [vmem:[%s2438_s23 + $0x1f8] sm:$0xff]  }
  0x2a   : > { %1932 = vmatmul.mubr.msk.bf16.gmra.mrb[12].mxu0 %vm647_vm1, %v2080_v18 }
  0x2b   : > { %1996 = vmatmul.mubr.msk.bf16.gmra.mrb[12].mxu1 %vm647_vm1, %v2081_v19  ;;  %1935 = vmatprep.mubr.msk.bf16.mxu0 %vm647_vm1, %v2082_v20 }
  0x2c   : > { %1999 = vmatprep.mubr.msk.bf16.mxu1 %vm647_vm1, %v2083_v21 }
  0x32   : > { %1936 = vmatmul.mubr.msk.bf16.gmra.mrb[16].mxu0 %vm647_vm1, %v2084_v22 }
  0x33   : > { %2000 = vmatmul.mubr.msk.bf16.gmra.mrb[16].mxu1 %vm647_vm1, %v2085_v23  ;;  %1939 = vmatprep.mubr.msk.bf16.mxu0 %vm647_vm1, %v2086_v24 }
  0x34   : > { %2003 = vmatprep.mubr.msk.bf16.mxu1 %vm647_vm1, %v2087_v25 }
  0x3a   : > { %1940 = vmatmul.mubr.msk.bf16.gmra.mrb[20].mxu0 %vm647_vm1, %v2088_v26 }
  0x3b   : > { %2004 = vmatmul.mubr.msk.bf16.gmra.mrb[20].mxu1 %vm647_vm1, %v2089_v27  ;;  %1943 = vmatprep.mubr.msk.bf16.mxu0 %vm647_vm1, %v2090_v28 }
  0x3c   : > { %2007 = vmatprep.mubr.msk.bf16.mxu1 %vm647_vm1, %v2091_v29 }
  0x42   : > { %1944 = vmatmul.mubr.msk.bf16.gmra.mrb[24].mxu0 %vm647_vm1, %v2092_v30 }
  0x43   : > { %2008 = vmatmul.mubr.msk.bf16.gmra.mrb[24].mxu1 %vm647_vm1, %v2093_v31  ;;  %1947 = vmatprep.mubr.msk.bf16.mxu0 %vm647_vm1, %v2094_v32 }
  0x44   : > { %2011 = vmatprep.mubr.msk.bf16.mxu1 %vm647_vm1, %v2095_v33 }
  0x4a   : > { %1948 = vmatmul.mubr.msk.bf16.gmra.mrb[28].mxu0 %vm647_vm1, %v2096_v34 }
  0x4b   : > { %2012 = vmatmul.mubr.msk.bf16.gmra.mrb[28].mxu1 %vm647_vm1, %v2097_v35  ;;  %1951 = vmatprep.mubr.msk.bf16.mxu0 %vm647_vm1, %v2098_v36 }
  0x4c   : > { %2015 = vmatprep.mubr.msk.bf16.mxu1 %vm647_vm1, %v2099_v37 }
  0x52   : > { %1952 = vmatmul.mubr.msk.bf16.gmra.mrb[32].mxu0 %vm647_vm1, %v2100_v38 }
  0x53   : > { %2016 = vmatmul.mubr.msk.bf16.gmra.mrb[32].mxu1 %vm647_vm1, %v2101_v39  ;;  %1955 = vmatprep.mubr.msk.bf16.mxu0 %vm647_vm1, %v2102_v40 }
  0x54   : > { %2019 = vmatprep.mubr.msk.bf16.mxu1 %vm647_vm1, %v2103_v41 }
  0x5a   : > { %1956 = vmatmul.mubr.msk.bf16.gmra.mrb[36].mxu0 %vm647_vm1, %v2104_v42 }
  0x5b   : > { %2020 = vmatmul.mubr.msk.bf16.gmra.mrb[36].mxu1 %vm647_vm1, %v2105_v43  ;;  %1959 = vmatprep.mubr.msk.bf16.mxu0 %vm647_vm1, %v2106_v44 }
  0x5c   : > { %2023 = vmatprep.mubr.msk.bf16.mxu1 %vm647_vm1, %v2107_v45 }
  0x62   : > { %1960 = vmatmul.mubr.msk.bf16.gmra.mrb[40].mxu0 %vm647_vm1, %v2108_v46 }
  0x63   : > { %2024 = vmatmul.mubr.msk.bf16.gmra.mrb[40].mxu1 %vm647_vm1, %v2109_v47  ;;  %1963 = vmatprep.mubr.msk.bf16.mxu0 %vm647_vm1, %v2110_v48 }
  0x64   : > { %2027 = vmatprep.mubr.msk.bf16.mxu1 %vm647_vm1, %v2111_v49 }
  0x6a   : > { %1964 = vmatmul.mubr.msk.bf16.gmra.mrb[44].mxu0 %vm647_vm1, %v2112_v50 }
  0x6b   : > { %2028 = vmatmul.mubr.msk.bf16.gmra.mrb[44].mxu1 %vm647_vm1, %v2113_v51  ;;  %1967 = vmatprep.mubr.msk.bf16.mxu0 %vm647_vm1, %v2114_v52 }
  0x6c   : > { %2031 = vmatprep.mubr.msk.bf16.mxu1 %vm647_vm1, %v2115_v53 }
  0x72   : > { %1968 = vmatmul.mubr.msk.bf16.gmra.mrb[48].mxu0 %vm647_vm1, %v2116_v54 }
  0x73   : > { %2032 = vmatmul.mubr.msk.bf16.gmra.mrb[48].mxu1 %vm647_vm1, %v2117_v55  ;;  %1971 = vmatprep.mubr.msk.bf16.mxu0 %vm647_vm1, %v2118_v56 }
  0x74   : > { %2035 = vmatprep.mubr.msk.bf16.mxu1 %vm647_vm1, %v2119_v57 }
  0x7a   : > { %1972 = vmatmul.mubr.msk.bf16.gmra.mrb[52].mxu0 %vm647_vm1, %v2120_v58 }
  0x7b   : > { %2036 = vmatmul.mubr.msk.bf16.gmra.mrb[52].mxu1 %vm647_vm1, %v2121_v59  ;;  %1975 = vmatprep.mubr.msk.bf16.mxu0 %vm647_vm1, %v2122_v60 }
  0x7c   : > { %2039 = vmatprep.mubr.msk.bf16.mxu1 %vm647_vm1, %v2123_v61 }
  0x82   : > { %1976 = vmatmul.mubr.msk.bf16.gmra.mrb[56].mxu0 %vm647_vm1, %v2124_v62 }
  0x83   : > { %2040 = vmatmul.mubr.msk.bf16.gmra.mrb[56].mxu1 %vm647_vm1, %v2125_v63  ;;  %1979 = vmatprep.mubr.msk.bf16.mxu0 %vm647_vm1, %v2126_v0 }
  0x84   : > { %2043 = vmatprep.mubr.msk.bf16.mxu1 %vm647_vm1, %v2127_v1 }
  0x8a   : > { %1980 = vmatmul.mubr.msk.bf16.gmra.mrb[60].mxu0 %vm647_vm1, %v2128_v2 }
  0x8b   : > { %2044 = vmatmul.mubr.msk.bf16.gmra.mrb[60].mxu1 %vm647_vm1, %v2129_v3 }
  0xe5   : > { %v1921_v5 = vpop.f32.mrb[0].mxu0 }
  0xe6   : > { %v1985_v6 = vpop.f32.mrb[0].mxu1  ;;  %v887_v7 = vadd.f32 %v1921_v5, %v2571_v4  ;;  %v878_v9 = vpop.f32.mrb[1].mxu0 }
  0xe7   : > { %v1143_v8 = vadd.f32 %v1985_v6, %v2571_v4  ;;  %v1134_v10 = vpop.f32.mrb[1].mxu1  ;;  %v879_v11 = vadd.f32 %v2571_v4, %v878_v9  ;;  %v1922_v13 = vpop.f32.mrb[2].mxu0 }
  0xe8   : > { %v1135_v12 = vadd.f32 %v2571_v4, %v1134_v10  ;;  %v1986_v14 = vpop.f32.mrb[2].mxu1  ;;  %2130 = vtanh.f32 %v887_v7  ;;  %v890_v15 = vadd.f32 %v1922_v13, %v2571_v4  ;;  %v881_v16 = vpop.f32.mrb[3].mxu0 }
  0xe9   : > { %v1137_v17 = vpop.f32.mrb[3].mxu1  ;;  %2132 = vtanh.f32 %v1143_v8  ;;  %v1146_v18 = vadd.f32 %v1986_v14, %v2571_v4  ;;  %v882_v19 = vadd.f32 %v2571_v4, %v881_v16 }
  0xea   : > { %2134 = vtanh.f32 %v879_v11  ;;  %v1138_v20 = vadd.f32 %v2571_v4, %v1137_v17 }
  0xeb   : > { %2136 = vtanh.f32 %v1135_v12 }
  0xec   : > { %2138 = vtanh.f32 %v890_v15 }
  0xed   : > { %2140 = vtanh.f32 %v1146_v18  ;;  %v1925_v21 = vpop.f32.mrb[4].mxu0 }
  0xee   : > { %v1989_v22 = vpop.f32.mrb[4].mxu1  ;;  %2142 = vtanh.f32 %v882_v19  ;;  %v903_v23 = vadd.f32 %v1925_v21, %v2571_v4  ;;  %v894_v25 = vpop.f32.mrb[5].mxu0 }
  0xef   : > { %v1159_v24 = vadd.f32 %v1989_v22, %v2571_v4  ;;  %v1150_v26 = vpop.f32.mrb[5].mxu1  ;;  %2144 = vtanh.f32 %v1138_v20  ;;  %v895_v27 = vadd.f32 %v2571_v4, %v894_v25  ;;  %v1926_v29 = vpop.f32.mrb[6].mxu0 }
  0xf0   : > { %v1151_v28 = vadd.f32 %v2571_v4, %v1150_v26  ;;  %v1990_v30 = vpop.f32.mrb[6].mxu1  ;;  %2146 = vtanh.f32 %v903_v23  ;;  %v906_v31 = vadd.f32 %v1926_v29, %v2571_v4  ;;  %v897_v32 = vpop.f32.mrb[7].mxu0 }
  0xf1   : > { %v1153_v33 = vpop.f32.mrb[7].mxu1  ;;  %2148 = vtanh.f32 %v1159_v24  ;;  %v1162_v34 = vadd.f32 %v1990_v30, %v2571_v4  ;;  %v898_v36 = vadd.f32 %v2571_v4, %v897_v32 }
  0xf2   : > { %v2131_v35 = vpop.eup %2130  ;;  %2150 = vtanh.f32 %v895_v27  ;;  %v1154_v38 = vadd.f32 %v2571_v4, %v1153_v33 }
  0xf3   : > { %v2133_v37 = vpop.eup %2132  ;;  %1520 = vst.msk [vmem:[%s2589_s29 + $0x10] sm:$0xff] %vm1517_vm2, %v2131_v35  ;;  %2152 = vtanh.f32 %v1151_v28 }
  0xf4   : > { %v2135_v39 = vpop.eup %2134  ;;  %1584 = vst.msk [vmem:[%s2589_s29 + $0x210] sm:$0xff] %vm1517_vm2, %v2133_v37  ;;  %2154 = vtanh.f32 %v906_v31 }
  0xf5   : > { %v2137_v40 = vpop.eup %2136  ;;  %1518 = vst.msk [vmem:[%s2589_s29] sm:$0xff] %vm1517_vm2, %v2135_v39  ;;  %2156 = vtanh.f32 %v1162_v34  ;;  %v1929_v41 = vpop.f32.mrb[8].mxu0 }
  0xf6   : > { %v1993_v42 = vpop.f32.mrb[8].mxu1  ;;  %v2139_v43 = vpop.eup %2138  ;;  %1582 = vst.msk [vmem:[%s2589_s29 + $0x200] sm:$0xff] %vm1517_vm2, %v2137_v40  ;;  %2158 = vtanh.f32 %v898_v36  ;;  %v919_v44 = vadd.f32 %v1929_v41, %v2571_v4 }
  0xf7   : > { %v1175_v45 = vadd.f32 %v1993_v42, %v2571_v4  ;;  %v910_v46 = vpop.f32.mrb[9].mxu0  ;;  %v1166_v47 = vpop.f32.mrb[9].mxu1  ;;  %1521 = vst.msk [vmem:[%s2589_s29 + $0x18] sm:$0xff] %vm1517_vm2, %v2139_v43  ;;  %2160 = vtanh.f32 %v1154_v38 }
  0xf8   : > { %v2141_v48 = vpop.eup %2140  ;;  %v911_v49 = vadd.f32 %v2571_v4, %v910_v46  ;;  %v1167_v50 = vadd.f32 %v2571_v4, %v1166_v47  ;;  %v1930_v51 = vpop.f32.mrb[10].mxu0  ;;  %2162 = vtanh.f32 %v919_v44 }
  0xf9   : > { %v1994_v52 = vpop.f32.mrb[10].mxu1  ;;  %v2143_v53 = vpop.eup %2142  ;;  %1585 = vst.msk [vmem:[%s2589_s29 + $0x218] sm:$0xff] %vm1517_vm2, %v2141_v48  ;;  %v922_v54 = vadd.f32 %v1930_v51, %v2571_v4  ;;  %2164 = vtanh.f32 %v1175_v45 }
  0xfa   : > { %v913_v55 = vpop.f32.mrb[11].mxu0  ;;  %v1169_v56 = vpop.f32.mrb[11].mxu1  ;;  %1519 = vst.msk [vmem:[%s2589_s29 + $0x8] sm:$0xff] %vm1517_vm2, %v2143_v53  ;;  %v1178_v58 = vadd.f32 %v1994_v52, %v2571_v4  ;;  %2166 = vtanh.f32 %v911_v49 }
  0xfb   : > { %v2145_v57 = vpop.eup %2144  ;;  %v914_v60 = vadd.f32 %v2571_v4, %v913_v55  ;;  %2168 = vtanh.f32 %v1167_v50  ;;  %v1170_v62 = vadd.f32 %v2571_v4, %v1169_v56 }
  0xfc   : > { %v2147_v59 = vpop.eup %2146  ;;  %1583 = vst.msk [vmem:[%s2589_s29 + $0x208] sm:$0xff] %vm1517_vm2, %v2145_v57  ;;  %2170 = vtanh.f32 %v922_v54 }
  0xfd   : > { %v2149_v61 = vpop.eup %2148  ;;  %1524 = vst.msk [vmem:[%s2589_s29 + $0x30] sm:$0xff] %vm1517_vm2, %v2147_v59  ;;  %2172 = vtanh.f32 %v1178_v58  ;;  %v1933_v1 = vpop.f32.mrb[12].mxu0 }
  0xfe   : > { %v2151_v63 = vpop.eup %2150  ;;  %1588 = vst.msk [vmem:[%s2589_s29 + $0x230] sm:$0xff] %vm1517_vm2, %v2149_v61  ;;  %v1997_v2 = vpop.f32.mrb[12].mxu1  ;;  %2174 = vtanh.f32 %v914_v60  ;;  %v935_v5 = vadd.f32 %v1933_v1, %v2571_v4 }
  0xff   : > { %v2153_v0 = vpop.eup %2152  ;;  %1522 = vst.msk [vmem:[%s2589_s29 + $0x20] sm:$0xff] %vm1517_vm2, %v2151_v63  ;;  %v1191_v6 = vadd.f32 %v1997_v2, %v2571_v4  ;;  %v926_v7 = vpop.f32.mrb[13].mxu0  ;;  %2176 = vtanh.f32 %v1170_v62 }
 0x100   : > { %v2155_v3 = vpop.eup %2154  ;;  %1586 = vst.msk [vmem:[%s2589_s29 + $0x220] sm:$0xff] %vm1517_vm2, %v2153_v0  ;;  %v1182_v8 = vpop.f32.mrb[13].mxu1  ;;  %v927_v10 = vadd.f32 %v2571_v4, %v926_v7  ;;  %2178 = vtanh.f32 %v935_v5 }
 0x101   : > { %v2157_v9 = vpop.eup %2156  ;;  %1525 = vst.msk [vmem:[%s2589_s29 + $0x38] sm:$0xff] %vm1517_vm2, %v2155_v3  ;;  %v1183_v11 = vadd.f32 %v2571_v4, %v1182_v8  ;;  %v1934_v12 = vpop.f32.mrb[14].mxu0  ;;  %2180 = vtanh.f32 %v1191_v6 }
 0x102   : > { %v1998_v13 = vpop.f32.mrb[14].mxu1  ;;  %v2159_v14 = vpop.eup %2158  ;;  %1589 = vst.msk [vmem:[%s2589_s29 + $0x238] sm:$0xff] %vm1517_vm2, %v2157_v9  ;;  %v938_v15 = vadd.f32 %v1934_v12, %v2571_v4  ;;  %2182 = vtanh.f32 %v927_v10 }
 0x103   : > { %v929_v16 = vpop.f32.mrb[15].mxu0  ;;  %v1185_v17 = vpop.f32.mrb[15].mxu1  ;;  %1523 = vst.msk [vmem:[%s2589_s29 + $0x28] sm:$0xff] %vm1517_vm2, %v2159_v14  ;;  %v1194_v19 = vadd.f32 %v1998_v13, %v2571_v4  ;;  %2184 = vtanh.f32 %v1183_v11 }
 0x104   : > { %v2161_v18 = vpop.eup %2160  ;;  %v930_v21 = vadd.f32 %v2571_v4, %v929_v16  ;;  %v1186_v23 = vadd.f32 %v2571_v4, %v1185_v17  ;;  %2186 = vtanh.f32 %v938_v15 }
 0x105   : > { %v2163_v20 = vpop.eup %2162  ;;  %1587 = vst.msk [vmem:[%s2589_s29 + $0x228] sm:$0xff] %vm1517_vm2, %v2161_v18  ;;  %2188 = vtanh.f32 %v1194_v19  ;;  %v1937_v26 = vpop.f32.mrb[16].mxu0 }
 0x106   : > { %v2165_v22 = vpop.eup %2164  ;;  %1528 = vst.msk [vmem:[%s2589_s29 + $0x50] sm:$0xff] %vm1517_vm2, %v2163_v20  ;;  %v2001_v27 = vpop.f32.mrb[16].mxu1  ;;  %2190 = vtanh.f32 %v930_v21  ;;  %v951_v29 = vadd.f32 %v1937_v26, %v2571_v4 }
 0x107   : > { %v2167_v24 = vpop.eup %2166  ;;  %1592 = vst.msk [vmem:[%s2589_s29 + $0x250] sm:$0xff] %vm1517_vm2, %v2165_v22  ;;  %v1207_v30 = vadd.f32 %v2001_v27, %v2571_v4  ;;  %v942_v31 = vpop.f32.mrb[17].mxu0  ;;  %2192 = vtanh.f32 %v1186_v23 }
 0x108   : > { %v2169_v25 = vpop.eup %2168  ;;  %1526 = vst.msk [vmem:[%s2589_s29 + $0x40] sm:$0xff] %vm1517_vm2, %v2167_v24  ;;  %v1198_v32 = vpop.f32.mrb[17].mxu1  ;;  %v943_v34 = vadd.f32 %v2571_v4, %v942_v31  ;;  %2194 = vtanh.f32 %v951_v29 }
 0x109   : > { %v2171_v28 = vpop.eup %2170  ;;  %1590 = vst.msk [vmem:[%s2589_s29 + $0x240] sm:$0xff] %vm1517_vm2, %v2169_v25  ;;  %v1199_v35 = vadd.f32 %v2571_v4, %v1198_v32  ;;  %v1938_v36 = vpop.f32.mrb[18].mxu0  ;;  %2196 = vtanh.f32 %v1207_v30 }
 0x10a   : > { %v2173_v33 = vpop.eup %2172  ;;  %1529 = vst.msk [vmem:[%s2589_s29 + $0x58] sm:$0xff] %vm1517_vm2, %v2171_v28  ;;  %v2002_v37 = vpop.f32.mrb[18].mxu1  ;;  %v954_v39 = vadd.f32 %v1938_v36, %v2571_v4  ;;  %2198 = vtanh.f32 %v943_v34 }
 0x10b   : > { %v2175_v38 = vpop.eup %2174  ;;  %1593 = vst.msk [vmem:[%s2589_s29 + $0x258] sm:$0xff] %vm1517_vm2, %v2173_v33  ;;  %v945_v40 = vpop.f32.mrb[19].mxu0  ;;  %v1210_v43 = vadd.f32 %v2002_v37, %v2571_v4  ;;  %2200 = vtanh.f32 %v1199_v35 }
 0x10c   : > { %v1201_v41 = vpop.f32.mrb[19].mxu1  ;;  %v2177_v42 = vpop.eup %2176  ;;  %1527 = vst.msk [vmem:[%s2589_s29 + $0x48] sm:$0xff] %vm1517_vm2, %v2175_v38  ;;  %v946_v45 = vadd.f32 %v2571_v4, %v945_v40  ;;  %2202 = vtanh.f32 %v954_v39 }
 0x10d   : > { %v2179_v44 = vpop.eup %2178  ;;  %1591 = vst.msk [vmem:[%s2589_s29 + $0x248] sm:$0xff] %vm1517_vm2, %v2177_v42  ;;  %v1202_v47 = vadd.f32 %v2571_v4, %v1201_v41  ;;  %2204 = vtanh.f32 %v1210_v43  ;;  %v1941_v50 = vpop.f32.mrb[20].mxu0 }
 0x10e   : > { %v2181_v46 = vpop.eup %2180  ;;  %1532 = vst.msk [vmem:[%s2589_s29 + $0x70] sm:$0xff] %vm1517_vm2, %v2179_v44  ;;  %v2005_v51 = vpop.f32.mrb[20].mxu1  ;;  %2206 = vtanh.f32 %v946_v45  ;;  %v967_v53 = vadd.f32 %v1941_v50, %v2571_v4 }
 0x10f   : > { %v2183_v48 = vpop.eup %2182  ;;  %1596 = vst.msk [vmem:[%s2589_s29 + $0x270] sm:$0xff] %vm1517_vm2, %v2181_v46  ;;  %v1223_v54 = vadd.f32 %v2005_v51, %v2571_v4  ;;  %v958_v55 = vpop.f32.mrb[21].mxu0  ;;  %2208 = vtanh.f32 %v1202_v47 }
 0x110   : > { %v2185_v49 = vpop.eup %2184  ;;  %1530 = vst.msk [vmem:[%s2589_s29 + $0x60] sm:$0xff] %vm1517_vm2, %v2183_v48  ;;  %v1214_v56 = vpop.f32.mrb[21].mxu1  ;;  %v959_v58 = vadd.f32 %v2571_v4, %v958_v55  ;;  %2210 = vtanh.f32 %v967_v53 }
 0x111   : > { %v2187_v52 = vpop.eup %2186  ;;  %1594 = vst.msk [vmem:[%s2589_s29 + $0x260] sm:$0xff] %vm1517_vm2, %v2185_v49  ;;  %v1215_v59 = vadd.f32 %v2571_v4, %v1214_v56  ;;  %v1942_v60 = vpop.f32.mrb[22].mxu0  ;;  %2212 = vtanh.f32 %v1223_v54 }
 0x112   : > { %v2189_v57 = vpop.eup %2188  ;;  %1533 = vst.msk [vmem:[%s2589_s29 + $0x78] sm:$0xff] %vm1517_vm2, %v2187_v52  ;;  %v2006_v61 = vpop.f32.mrb[22].mxu1  ;;  %v970_v63 = vadd.f32 %v1942_v60, %v2571_v4  ;;  %2214 = vtanh.f32 %v959_v58 }
 0x113   : > { %v2191_v62 = vpop.eup %2190  ;;  %1597 = vst.msk [vmem:[%s2589_s29 + $0x278] sm:$0xff] %vm1517_vm2, %v2189_v57  ;;  %v961_v0 = vpop.f32.mrb[23].mxu0  ;;  %v1226_v3 = vadd.f32 %v2006_v61, %v2571_v4  ;;  %2216 = vtanh.f32 %v1215_v59 }
 0x114   : > { %v1217_v1 = vpop.f32.mrb[23].mxu1  ;;  %v2193_v2 = vpop.eup %2192  ;;  %1531 = vst.msk [vmem:[%s2589_s29 + $0x68] sm:$0xff] %vm1517_vm2, %v2191_v62  ;;  %v962_v6 = vadd.f32 %v2571_v4, %v961_v0  ;;  %2218 = vtanh.f32 %v970_v63 }
 0x115   : > { %v2195_v5 = vpop.eup %2194  ;;  %1595 = vst.msk [vmem:[%s2589_s29 + $0x268] sm:$0xff] %vm1517_vm2, %v2193_v2  ;;  %v1218_v8 = vadd.f32 %v2571_v4, %v1217_v1  ;;  %2220 = vtanh.f32 %v1226_v3  ;;  %v1945_v11 = vpop.f32.mrb[24].mxu0 }
 0x116   : > { %v2197_v7 = vpop.eup %2196  ;;  %1536 = vst.msk [vmem:[%s2589_s29 + $0x90] sm:$0xff] %vm1517_vm2, %v2195_v5  ;;  %v2009_v12 = vpop.f32.mrb[24].mxu1  ;;  %2222 = vtanh.f32 %v962_v6  ;;  %v983_v14 = vadd.f32 %v1945_v11, %v2571_v4 }
 0x117   : > { %v2199_v9 = vpop.eup %2198  ;;  %1600 = vst.msk [vmem:[%s2589_s29 + $0x290] sm:$0xff] %vm1517_vm2, %v2197_v7  ;;  %v1239_v15 = vadd.f32 %v2009_v12, %v2571_v4  ;;  %v974_v16 = vpop.f32.mrb[25].mxu0  ;;  %2224 = vtanh.f32 %v1218_v8 }
 0x118   : > { %v2201_v10 = vpop.eup %2200  ;;  %1534 = vst.msk [vmem:[%s2589_s29 + $0x80] sm:$0xff] %vm1517_vm2, %v2199_v9  ;;  %v1230_v17 = vpop.f32.mrb[25].mxu1  ;;  %v975_v19 = vadd.f32 %v2571_v4, %v974_v16  ;;  %2226 = vtanh.f32 %v983_v14 }
 0x119   : > { %v2203_v13 = vpop.eup %2202  ;;  %1598 = vst.msk [vmem:[%s2589_s29 + $0x280] sm:$0xff] %vm1517_vm2, %v2201_v10  ;;  %v1231_v20 = vadd.f32 %v2571_v4, %v1230_v17  ;;  %v1946_v21 = vpop.f32.mrb[26].mxu0  ;;  %2228 = vtanh.f32 %v1239_v15 }
 0x11a   : > { %v2205_v18 = vpop.eup %2204  ;;  %1537 = vst.msk [vmem:[%s2589_s29 + $0x98] sm:$0xff] %vm1517_vm2, %v2203_v13  ;;  %v2010_v22 = vpop.f32.mrb[26].mxu1  ;;  %v986_v24 = vadd.f32 %v1946_v21, %v2571_v4  ;;  %2230 = vtanh.f32 %v975_v19 }
 0x11b   : > { %v2207_v23 = vpop.eup %2206  ;;  %1601 = vst.msk [vmem:[%s2589_s29 + $0x298] sm:$0xff] %vm1517_vm2, %v2205_v18  ;;  %v977_v25 = vpop.f32.mrb[27].mxu0  ;;  %v1242_v28 = vadd.f32 %v2010_v22, %v2571_v4  ;;  %2232 = vtanh.f32 %v1231_v20 }
 0x11c   : > { %v1233_v26 = vpop.f32.mrb[27].mxu1  ;;  %v2209_v27 = vpop.eup %2208  ;;  %1535 = vst.msk [vmem:[%s2589_s29 + $0x88] sm:$0xff] %vm1517_vm2, %v2207_v23  ;;  %v978_v30 = vadd.f32 %v2571_v4, %v977_v25  ;;  %2234 = vtanh.f32 %v986_v24 }
 0x11d   : > { %v2211_v29 = vpop.eup %2210  ;;  %1599 = vst.msk [vmem:[%s2589_s29 + $0x288] sm:$0xff] %vm1517_vm2, %v2209_v27  ;;  %v1234_v32 = vadd.f32 %v2571_v4, %v1233_v26  ;;  %2236 = vtanh.f32 %v1242_v28  ;;  %v1949_v35 = vpop.f32.mrb[28].mxu0 }
 0x11e   : > { %v2213_v31 = vpop.eup %2212  ;;  %1540 = vst.msk [vmem:[%s2589_s29 + $0xb0] sm:$0xff] %vm1517_vm2, %v2211_v29  ;;  %v2013_v36 = vpop.f32.mrb[28].mxu1  ;;  %2238 = vtanh.f32 %v978_v30  ;;  %v999_v38 = vadd.f32 %v1949_v35, %v2571_v4 }
 0x11f   : > { %v2215_v33 = vpop.eup %2214  ;;  %1604 = vst.msk [vmem:[%s2589_s29 + $0x2b0] sm:$0xff] %vm1517_vm2, %v2213_v31  ;;  %v1255_v39 = vadd.f32 %v2013_v36, %v2571_v4  ;;  %v990_v40 = vpop.f32.mrb[29].mxu0  ;;  %2240 = vtanh.f32 %v1234_v32 }
 0x120   : > { %v2217_v34 = vpop.eup %2216  ;;  %1538 = vst.msk [vmem:[%s2589_s29 + $0xa0] sm:$0xff] %vm1517_vm2, %v2215_v33  ;;  %v1246_v41 = vpop.f32.mrb[29].mxu1  ;;  %v991_v43 = vadd.f32 %v2571_v4, %v990_v40  ;;  %2242 = vtanh.f32 %v999_v38 }
 0x121   : > { %v2219_v37 = vpop.eup %2218  ;;  %1602 = vst.msk [vmem:[%s2589_s29 + $0x2a0] sm:$0xff] %vm1517_vm2, %v2217_v34  ;;  %v1247_v44 = vadd.f32 %v2571_v4, %v1246_v41  ;;  %v1950_v45 = vpop.f32.mrb[30].mxu0  ;;  %2244 = vtanh.f32 %v1255_v39 }
 0x122   : > { %v2221_v42 = vpop.eup %2220  ;;  %1541 = vst.msk [vmem:[%s2589_s29 + $0xb8] sm:$0xff] %vm1517_vm2, %v2219_v37  ;;  %v2014_v46 = vpop.f32.mrb[30].mxu1  ;;  %v1002_v48 = vadd.f32 %v1950_v45, %v2571_v4  ;;  %2246 = vtanh.f32 %v991_v43 }
 0x123   : > { %v2223_v47 = vpop.eup %2222  ;;  %1605 = vst.msk [vmem:[%s2589_s29 + $0x2b8] sm:$0xff] %vm1517_vm2, %v2221_v42  ;;  %v993_v49 = vpop.f32.mrb[31].mxu0  ;;  %v1258_v52 = vadd.f32 %v2014_v46, %v2571_v4  ;;  %2248 = vtanh.f32 %v1247_v44 }
 0x124   : > { %v1249_v50 = vpop.f32.mrb[31].mxu1  ;;  %v2225_v51 = vpop.eup %2224  ;;  %1539 = vst.msk [vmem:[%s2589_s29 + $0xa8] sm:$0xff] %vm1517_vm2, %v2223_v47  ;;  %v994_v54 = vadd.f32 %v2571_v4, %v993_v49  ;;  %2250 = vtanh.f32 %v1002_v48 }
 0x125   : > { %v2227_v53 = vpop.eup %2226  ;;  %1603 = vst.msk [vmem:[%s2589_s29 + $0x2a8] sm:$0xff] %vm1517_vm2, %v2225_v51  ;;  %v1250_v56 = vadd.f32 %v2571_v4, %v1249_v50  ;;  %2252 = vtanh.f32 %v1258_v52  ;;  %v1953_v59 = vpop.f32.mrb[32].mxu0 }
 0x126   : > { %v2229_v55 = vpop.eup %2228  ;;  %1544 = vst.msk [vmem:[%s2589_s29 + $0xd0] sm:$0xff] %vm1517_vm2, %v2227_v53  ;;  %v2017_v60 = vpop.f32.mrb[32].mxu1  ;;  %2254 = vtanh.f32 %v994_v54  ;;  %v1015_v62 = vadd.f32 %v1953_v59, %v2571_v4 }
 0x127   : > { %v2231_v57 = vpop.eup %2230  ;;  %1608 = vst.msk [vmem:[%s2589_s29 + $0x2d0] sm:$0xff] %vm1517_vm2, %v2229_v55  ;;  %v1271_v63 = vadd.f32 %v2017_v60, %v2571_v4  ;;  %v1006_v0 = vpop.f32.mrb[33].mxu0  ;;  %2256 = vtanh.f32 %v1250_v56 }
 0x128   : > { %v2233_v58 = vpop.eup %2232  ;;  %1542 = vst.msk [vmem:[%s2589_s29 + $0xc0] sm:$0xff] %vm1517_vm2, %v2231_v57  ;;  %v1262_v1 = vpop.f32.mrb[33].mxu1  ;;  %v1007_v3 = vadd.f32 %v2571_v4, %v1006_v0  ;;  %2258 = vtanh.f32 %v1015_v62 }
 0x129   : > { %v2235_v61 = vpop.eup %2234  ;;  %1606 = vst.msk [vmem:[%s2589_s29 + $0x2c0] sm:$0xff] %vm1517_vm2, %v2233_v58  ;;  %v1263_v5 = vadd.f32 %v2571_v4, %v1262_v1  ;;  %v1954_v6 = vpop.f32.mrb[34].mxu0  ;;  %2260 = vtanh.f32 %v1271_v63 }
 0x12a   : > { %v2237_v2 = vpop.eup %2236  ;;  %1545 = vst.msk [vmem:[%s2589_s29 + $0xd8] sm:$0xff] %vm1517_vm2, %v2235_v61  ;;  %v2018_v7 = vpop.f32.mrb[34].mxu1  ;;  %v1018_v9 = vadd.f32 %v1954_v6, %v2571_v4  ;;  %2262 = vtanh.f32 %v1007_v3 }
 0x12b   : > { %v2239_v8 = vpop.eup %2238  ;;  %1609 = vst.msk [vmem:[%s2589_s29 + $0x2d8] sm:$0xff] %vm1517_vm2, %v2237_v2  ;;  %v1009_v10 = vpop.f32.mrb[35].mxu0  ;;  %v1274_v13 = vadd.f32 %v2018_v7, %v2571_v4  ;;  %2264 = vtanh.f32 %v1263_v5 }
 0x12c   : > { %v1265_v11 = vpop.f32.mrb[35].mxu1  ;;  %v2241_v12 = vpop.eup %2240  ;;  %1543 = vst.msk [vmem:[%s2589_s29 + $0xc8] sm:$0xff] %vm1517_vm2, %v2239_v8  ;;  %v1010_v15 = vadd.f32 %v2571_v4, %v1009_v10  ;;  %2266 = vtanh.f32 %v1018_v9 }
 0x12d   : > { %v2243_v14 = vpop.eup %2242  ;;  %1607 = vst.msk [vmem:[%s2589_s29 + $0x2c8] sm:$0xff] %vm1517_vm2, %v2241_v12  ;;  %v1266_v17 = vadd.f32 %v2571_v4, %v1265_v11  ;;  %2268 = vtanh.f32 %v1274_v13  ;;  %v1957_v20 = vpop.f32.mrb[36].mxu0 }
 0x12e   : > { %v2245_v16 = vpop.eup %2244  ;;  %1548 = vst.msk [vmem:[%s2589_s29 + $0xf0] sm:$0xff] %vm1517_vm2, %v2243_v14  ;;  %v2021_v21 = vpop.f32.mrb[36].mxu1  ;;  %2270 = vtanh.f32 %v1010_v15  ;;  %v1031_v23 = vadd.f32 %v1957_v20, %v2571_v4 }
 0x12f   : > { %v2247_v18 = vpop.eup %2246  ;;  %1612 = vst.msk [vmem:[%s2589_s29 + $0x2f0] sm:$0xff] %vm1517_vm2, %v2245_v16  ;;  %v1287_v24 = vadd.f32 %v2021_v21, %v2571_v4  ;;  %v1022_v25 = vpop.f32.mrb[37].mxu0  ;;  %2272 = vtanh.f32 %v1266_v17 }
 0x130   : > { %v2249_v19 = vpop.eup %2248  ;;  %1546 = vst.msk [vmem:[%s2589_s29 + $0xe0] sm:$0xff] %vm1517_vm2, %v2247_v18  ;;  %v1278_v26 = vpop.f32.mrb[37].mxu1  ;;  %v1023_v28 = vadd.f32 %v2571_v4, %v1022_v25  ;;  %2274 = vtanh.f32 %v1031_v23 }
 0x131   : > { %v2251_v22 = vpop.eup %2250  ;;  %1610 = vst.msk [vmem:[%s2589_s29 + $0x2e0] sm:$0xff] %vm1517_vm2, %v2249_v19  ;;  %v1279_v29 = vadd.f32 %v2571_v4, %v1278_v26  ;;  %v1958_v30 = vpop.f32.mrb[38].mxu0  ;;  %2276 = vtanh.f32 %v1287_v24 }
 0x132   : > { %v2253_v27 = vpop.eup %2252  ;;  %1549 = vst.msk [vmem:[%s2589_s29 + $0xf8] sm:$0xff] %vm1517_vm2, %v2251_v22  ;;  %v2022_v31 = vpop.f32.mrb[38].mxu1  ;;  %v1034_v33 = vadd.f32 %v1958_v30, %v2571_v4  ;;  %2278 = vtanh.f32 %v1023_v28 }
 0x133   : > { %v2255_v32 = vpop.eup %2254  ;;  %1613 = vst.msk [vmem:[%s2589_s29 + $0x2f8] sm:$0xff] %vm1517_vm2, %v2253_v27  ;;  %v1025_v34 = vpop.f32.mrb[39].mxu0  ;;  %v1290_v37 = vadd.f32 %v2022_v31, %v2571_v4  ;;  %2280 = vtanh.f32 %v1279_v29 }
 0x134   : > { %v1281_v35 = vpop.f32.mrb[39].mxu1  ;;  %v2257_v36 = vpop.eup %2256  ;;  %1547 = vst.msk [vmem:[%s2589_s29 + $0xe8] sm:$0xff] %vm1517_vm2, %v2255_v32  ;;  %v1026_v39 = vadd.f32 %v2571_v4, %v1025_v34  ;;  %2282 = vtanh.f32 %v1034_v33 }
 0x135   : > { %v2259_v38 = vpop.eup %2258  ;;  %1611 = vst.msk [vmem:[%s2589_s29 + $0x2e8] sm:$0xff] %vm1517_vm2, %v2257_v36  ;;  %v1282_v41 = vadd.f32 %v2571_v4, %v1281_v35  ;;  %2284 = vtanh.f32 %v1290_v37  ;;  %v1961_v44 = vpop.f32.mrb[40].mxu0 }
 0x136   : > { %v2261_v40 = vpop.eup %2260  ;;  %1552 = vst.msk [vmem:[%s2589_s29 + $0x110] sm:$0xff] %vm1517_vm2, %v2259_v38  ;;  %v2025_v45 = vpop.f32.mrb[40].mxu1  ;;  %2286 = vtanh.f32 %v1026_v39  ;;  %v1047_v47 = vadd.f32 %v1961_v44, %v2571_v4 }
 0x137   : > { %v2263_v42 = vpop.eup %2262  ;;  %1616 = vst.msk [vmem:[%s2589_s29 + $0x310] sm:$0xff] %vm1517_vm2, %v2261_v40  ;;  %v1303_v48 = vadd.f32 %v2025_v45, %v2571_v4  ;;  %v1038_v49 = vpop.f32.mrb[41].mxu0  ;;  %2288 = vtanh.f32 %v1282_v41 }
 0x138   : > { %v2265_v43 = vpop.eup %2264  ;;  %1550 = vst.msk [vmem:[%s2589_s29 + $0x100] sm:$0xff] %vm1517_vm2, %v2263_v42  ;;  %v1294_v50 = vpop.f32.mrb[41].mxu1  ;;  %v1039_v52 = vadd.f32 %v2571_v4, %v1038_v49  ;;  %2290 = vtanh.f32 %v1047_v47 }
 0x139   : > { %v2267_v46 = vpop.eup %2266  ;;  %1614 = vst.msk [vmem:[%s2589_s29 + $0x300] sm:$0xff] %vm1517_vm2, %v2265_v43  ;;  %v1295_v53 = vadd.f32 %v2571_v4, %v1294_v50  ;;  %v1962_v54 = vpop.f32.mrb[42].mxu0  ;;  %2292 = vtanh.f32 %v1303_v48 }
 0x13a   : > { %v2269_v51 = vpop.eup %2268  ;;  %1553 = vst.msk [vmem:[%s2589_s29 + $0x118] sm:$0xff] %vm1517_vm2, %v2267_v46  ;;  %v2026_v55 = vpop.f32.mrb[42].mxu1  ;;  %v1050_v57 = vadd.f32 %v1962_v54, %v2571_v4  ;;  %2294 = vtanh.f32 %v1039_v52 }
 0x13b   : > { %v2271_v56 = vpop.eup %2270  ;;  %1617 = vst.msk [vmem:[%s2589_s29 + $0x318] sm:$0xff] %vm1517_vm2, %v2269_v51  ;;  %v1041_v58 = vpop.f32.mrb[43].mxu0  ;;  %v1306_v61 = vadd.f32 %v2026_v55, %v2571_v4  ;;  %2296 = vtanh.f32 %v1295_v53 }
 0x13c   : > { %v1297_v59 = vpop.f32.mrb[43].mxu1  ;;  %v2273_v60 = vpop.eup %2272  ;;  %1551 = vst.msk [vmem:[%s2589_s29 + $0x108] sm:$0xff] %vm1517_vm2, %v2271_v56  ;;  %v1042_v63 = vadd.f32 %v2571_v4, %v1041_v58  ;;  %2298 = vtanh.f32 %v1050_v57 }
 0x13d   : > { %v2275_v62 = vpop.eup %2274  ;;  %1615 = vst.msk [vmem:[%s2589_s29 + $0x308] sm:$0xff] %vm1517_vm2, %v2273_v60  ;;  %v1298_v1 = vadd.f32 %v2571_v4, %v1297_v59  ;;  %2300 = vtanh.f32 %v1306_v61  ;;  %v1965_v5 = vpop.f32.mrb[44].mxu0 }
 0x13e   : > { %v2277_v0 = vpop.eup %2276  ;;  %1556 = vst.msk [vmem:[%s2589_s29 + $0x130] sm:$0xff] %vm1517_vm2, %v2275_v62  ;;  %v2029_v6 = vpop.f32.mrb[44].mxu1  ;;  %2302 = vtanh.f32 %v1042_v63  ;;  %v1063_v8 = vadd.f32 %v1965_v5, %v2571_v4 }
 0x13f   : > { %v2279_v2 = vpop.eup %2278  ;;  %1620 = vst.msk [vmem:[%s2589_s29 + $0x330] sm:$0xff] %vm1517_vm2, %v2277_v0  ;;  %v1319_v9 = vadd.f32 %v2029_v6, %v2571_v4  ;;  %v1054_v10 = vpop.f32.mrb[45].mxu0  ;;  %2304 = vtanh.f32 %v1298_v1 }
 0x140   : > { %v2281_v3 = vpop.eup %2280  ;;  %1554 = vst.msk [vmem:[%s2589_s29 + $0x120] sm:$0xff] %vm1517_vm2, %v2279_v2  ;;  %v1310_v11 = vpop.f32.mrb[45].mxu1  ;;  %v1055_v13 = vadd.f32 %v2571_v4, %v1054_v10  ;;  %2306 = vtanh.f32 %v1063_v8  ;;  %v2878_v2 = vld [vmem:[%s2973_s2] ss:$0 sm:$0xff] }
 0x141   : > { %v2283_v7 = vpop.eup %2282  ;;  %1618 = vst.msk [vmem:[%s2589_s29 + $0x320] sm:$0xff] %vm1517_vm2, %v2281_v3  ;;  %v1311_v14 = vadd.f32 %v2571_v4, %v1310_v11  ;;  %v1966_v15 = vpop.f32.mrb[46].mxu0  ;;  %2308 = vtanh.f32 %v1319_v9 }
 0x142   : > { %v2285_v12 = vpop.eup %2284  ;;  %1557 = vst.msk [vmem:[%s2589_s29 + $0x138] sm:$0xff] %vm1517_vm2, %v2283_v7  ;;  %v2030_v16 = vpop.f32.mrb[46].mxu1  ;;  %v1066_v18 = vadd.f32 %v1966_v15, %v2571_v4  ;;  %2310 = vtanh.f32 %v1055_v13 }
 0x143   : > { %v2287_v17 = vpop.eup %2286  ;;  %1621 = vst.msk [vmem:[%s2589_s29 + $0x338] sm:$0xff] %vm1517_vm2, %v2285_v12  ;;  %v1057_v19 = vpop.f32.mrb[47].mxu0  ;;  %v1322_v22 = vadd.f32 %v2030_v16, %v2571_v4  ;;  %2312 = vtanh.f32 %v1311_v14 }
 0x144   : > { %v1313_v20 = vpop.f32.mrb[47].mxu1  ;;  %v2289_v21 = vpop.eup %2288  ;;  %1555 = vst.msk [vmem:[%s2589_s29 + $0x128] sm:$0xff] %vm1517_vm2, %v2287_v17  ;;  %v1058_v24 = vadd.f32 %v2571_v4, %v1057_v19  ;;  %2314 = vtanh.f32 %v1066_v18 }
 0x145   : > { %v2291_v23 = vpop.eup %2290  ;;  %1619 = vst.msk [vmem:[%s2589_s29 + $0x328] sm:$0xff] %vm1517_vm2, %v2289_v21  ;;  %v1314_v26 = vadd.f32 %v2571_v4, %v1313_v20  ;;  %2316 = vtanh.f32 %v1322_v22  ;;  %v1969_v29 = vpop.f32.mrb[48].mxu0 }
 0x146   : > { %v2293_v25 = vpop.eup %2292  ;;  %1560 = vst.msk [vmem:[%s2589_s29 + $0x150] sm:$0xff] %vm1517_vm2, %v2291_v23  ;;  %v2033_v30 = vpop.f32.mrb[48].mxu1  ;;  %2318 = vtanh.f32 %v1058_v24  ;;  %v1079_v32 = vadd.f32 %v1969_v29, %v2571_v4 }
 0x147   : > { %v2295_v27 = vpop.eup %2294  ;;  %1624 = vst.msk [vmem:[%s2589_s29 + $0x350] sm:$0xff] %vm1517_vm2, %v2293_v25  ;;  %v1335_v33 = vadd.f32 %v2033_v30, %v2571_v4  ;;  %v1070_v34 = vpop.f32.mrb[49].mxu0  ;;  %2320 = vtanh.f32 %v1314_v26 }
 0x148   : > { %v2297_v28 = vpop.eup %2296  ;;  %1558 = vst.msk [vmem:[%s2589_s29 + $0x140] sm:$0xff] %vm1517_vm2, %v2295_v27  ;;  %v1326_v35 = vpop.f32.mrb[49].mxu1  ;;  %v1071_v37 = vadd.f32 %v2571_v4, %v1070_v34  ;;  %2322 = vtanh.f32 %v1079_v32 }
 0x149   : > { %v2299_v31 = vpop.eup %2298  ;;  %1622 = vst.msk [vmem:[%s2589_s29 + $0x340] sm:$0xff] %vm1517_vm2, %v2297_v28  ;;  %v1327_v38 = vadd.f32 %v2571_v4, %v1326_v35  ;;  %v1970_v39 = vpop.f32.mrb[50].mxu0  ;;  %2324 = vtanh.f32 %v1335_v33 }
 0x14a   : > { %v2301_v36 = vpop.eup %2300  ;;  %1561 = vst.msk [vmem:[%s2589_s29 + $0x158] sm:$0xff] %vm1517_vm2, %v2299_v31  ;;  %v2034_v40 = vpop.f32.mrb[50].mxu1  ;;  %v1082_v42 = vadd.f32 %v1970_v39, %v2571_v4  ;;  %2326 = vtanh.f32 %v1071_v37 }
 0x14b   : > { %v2303_v41 = vpop.eup %2302  ;;  %1625 = vst.msk [vmem:[%s2589_s29 + $0x358] sm:$0xff] %vm1517_vm2, %v2301_v36  ;;  %v1073_v43 = vpop.f32.mrb[51].mxu0  ;;  %v1338_v46 = vadd.f32 %v2034_v40, %v2571_v4  ;;  %2328 = vtanh.f32 %v1327_v38 }
 0x14c   : > { %v1329_v44 = vpop.f32.mrb[51].mxu1  ;;  %v2305_v45 = vpop.eup %2304  ;;  %1559 = vst.msk [vmem:[%s2589_s29 + $0x148] sm:$0xff] %vm1517_vm2, %v2303_v41  ;;  %v1074_v48 = vadd.f32 %v2571_v4, %v1073_v43  ;;  %2330 = vtanh.f32 %v1082_v42 }
 0x14d   : > { %v2307_v47 = vpop.eup %2306  ;;  %1623 = vst.msk [vmem:[%s2589_s29 + $0x348] sm:$0xff] %vm1517_vm2, %v2305_v45  ;;  %v1330_v50 = vadd.f32 %v2571_v4, %v1329_v44  ;;  %2332 = vtanh.f32 %v1338_v46  ;;  %v1973_v53 = vpop.f32.mrb[52].mxu0 }
 0x14e   : > { %v2309_v49 = vpop.eup %2308  ;;  %1564 = vst.msk [vmem:[%s2589_s29 + $0x170] sm:$0xff] %vm1517_vm2, %v2307_v47  ;;  %v2037_v54 = vpop.f32.mrb[52].mxu1  ;;  %2334 = vtanh.f32 %v1074_v48  ;;  %v1095_v56 = vadd.f32 %v1973_v53, %v2571_v4 }
 0x14f   : > { %v2311_v51 = vpop.eup %2310  ;;  %1628 = vst.msk [vmem:[%s2589_s29 + $0x370] sm:$0xff] %vm1517_vm2, %v2309_v49  ;;  %v1351_v57 = vadd.f32 %v2037_v54, %v2571_v4  ;;  %v1086_v58 = vpop.f32.mrb[53].mxu0  ;;  %2336 = vtanh.f32 %v1330_v50 }
 0x150   : > { %v2313_v52 = vpop.eup %2312  ;;  %1562 = vst.msk [vmem:[%s2589_s29 + $0x160] sm:$0xff] %vm1517_vm2, %v2311_v51  ;;  %v1342_v59 = vpop.f32.mrb[53].mxu1  ;;  %v1087_v61 = vadd.f32 %v2571_v4, %v1086_v58  ;;  %2338 = vtanh.f32 %v1095_v56 }
 0x151   : > { %v2315_v55 = vpop.eup %2314  ;;  %1626 = vst.msk [vmem:[%s2589_s29 + $0x360] sm:$0xff] %vm1517_vm2, %v2313_v52  ;;  %v1343_v62 = vadd.f32 %v2571_v4, %v1342_v59  ;;  %v1974_v63 = vpop.f32.mrb[54].mxu0  ;;  %2340 = vtanh.f32 %v1351_v57 }
 0x152   : > { %v2317_v60 = vpop.eup %2316  ;;  %1565 = vst.msk [vmem:[%s2589_s29 + $0x178] sm:$0xff] %vm1517_vm2, %v2315_v55  ;;  %v2038_v0 = vpop.f32.mrb[54].mxu1  ;;  %v1098_v3 = vadd.f32 %v2878_v2, %v1974_v63  ;;  %2342 = vtanh.f32 %v1087_v61 }
 0x153   : > { %v2319_v1 = vpop.eup %2318  ;;  %1629 = vst.msk [vmem:[%s2589_s29 + $0x378] sm:$0xff] %vm1517_vm2, %v2317_v60  ;;  %v1089_v5 = vpop.f32.mrb[55].mxu0  ;;  %v1354_v4 = vadd.f32 %v2878_v2, %v2038_v0  ;;  %2344 = vtanh.f32 %v1343_v62 }
 0x154   : > { %v1345_v6 = vpop.f32.mrb[55].mxu1  ;;  %v2321_v7 = vpop.eup %2320  ;;  %1563 = vst.msk [vmem:[%s2589_s29 + $0x168] sm:$0xff] %vm1517_vm2, %v2319_v1  ;;  %v1090_v9 = vadd.f32 %v2878_v2, %v1089_v5  ;;  %2346 = vtanh.f32 %v1098_v3 }
 0x155   : > { %v2323_v8 = vpop.eup %2322  ;;  %1627 = vst.msk [vmem:[%s2589_s29 + $0x368] sm:$0xff] %vm1517_vm2, %v2321_v7  ;;  %v1346_v11 = vadd.f32 %v2878_v2, %v1345_v6  ;;  %2348 = vtanh.f32 %v1354_v4  ;;  %v1977_v14 = vpop.f32.mrb[56].mxu0 }
 0x156   : > { %v2325_v10 = vpop.eup %2324  ;;  %1568 = vst.msk [vmem:[%s2589_s29 + $0x190] sm:$0xff] %vm1517_vm2, %v2323_v8  ;;  %v2041_v15 = vpop.f32.mrb[56].mxu1  ;;  %2350 = vtanh.f32 %v1090_v9  ;;  %v1111_v17 = vadd.f32 %v2878_v2, %v1977_v14 }
 0x157   : > { %v2327_v12 = vpop.eup %2326  ;;  %1632 = vst.msk [vmem:[%s2589_s29 + $0x390] sm:$0xff] %vm1517_vm2, %v2325_v10  ;;  %v1367_v18 = vadd.f32 %v2878_v2, %v2041_v15  ;;  %v1102_v19 = vpop.f32.mrb[57].mxu0  ;;  %2352 = vtanh.f32 %v1346_v11 }
 0x158   : > { %v2329_v13 = vpop.eup %2328  ;;  %1566 = vst.msk [vmem:[%s2589_s29 + $0x180] sm:$0xff] %vm1517_vm2, %v2327_v12  ;;  %v1358_v20 = vpop.f32.mrb[57].mxu1  ;;  %v1103_v22 = vadd.f32 %v2878_v2, %v1102_v19  ;;  %2354 = vtanh.f32 %v1111_v17 }
 0x159   : > { %v2331_v16 = vpop.eup %2330  ;;  %1630 = vst.msk [vmem:[%s2589_s29 + $0x380] sm:$0xff] %vm1517_vm2, %v2329_v13  ;;  %v1359_v23 = vadd.f32 %v2878_v2, %v1358_v20  ;;  %v1978_v24 = vpop.f32.mrb[58].mxu0  ;;  %2356 = vtanh.f32 %v1367_v18 }
 0x15a   : > { %v2333_v21 = vpop.eup %2332  ;;  %1569 = vst.msk [vmem:[%s2589_s29 + $0x198] sm:$0xff] %vm1517_vm2, %v2331_v16  ;;  %v2042_v25 = vpop.f32.mrb[58].mxu1  ;;  %v1114_v27 = vadd.f32 %v2878_v2, %v1978_v24  ;;  %2358 = vtanh.f32 %v1103_v22 }
 0x15b   : > { %v2335_v26 = vpop.eup %2334  ;;  %1633 = vst.msk [vmem:[%s2589_s29 + $0x398] sm:$0xff] %vm1517_vm2, %v2333_v21  ;;  %v1105_v28 = vpop.f32.mrb[59].mxu0  ;;  %v1370_v31 = vadd.f32 %v2878_v2, %v2042_v25  ;;  %2360 = vtanh.f32 %v1359_v23 }
 0x15c   : > { %v1361_v29 = vpop.f32.mrb[59].mxu1  ;;  %v2337_v30 = vpop.eup %2336  ;;  %1567 = vst.msk [vmem:[%s2589_s29 + $0x188] sm:$0xff] %vm1517_vm2, %v2335_v26  ;;  %v1106_v33 = vadd.f32 %v2878_v2, %v1105_v28  ;;  %2362 = vtanh.f32 %v1114_v27 }
 0x15d   : > { %v2339_v32 = vpop.eup %2338  ;;  %1631 = vst.msk [vmem:[%s2589_s29 + $0x388] sm:$0xff] %vm1517_vm2, %v2337_v30  ;;  %v1362_v35 = vadd.f32 %v2878_v2, %v1361_v29  ;;  %2364 = vtanh.f32 %v1370_v31  ;;  %v1981_v38 = vpop.f32.mrb[60].mxu0 }
 0x15e   : > { %v2341_v34 = vpop.eup %2340  ;;  %1572 = vst.msk [vmem:[%s2589_s29 + $0x1b0] sm:$0xff] %vm1517_vm2, %v2339_v32  ;;  %v2045_v39 = vpop.f32.mrb[60].mxu1  ;;  %2366 = vtanh.f32 %v1106_v33  ;;  %v1127_v41 = vadd.f32 %v2878_v2, %v1981_v38 }
 0x15f   : > { %v2343_v36 = vpop.eup %2342  ;;  %1636 = vst.msk [vmem:[%s2589_s29 + $0x3b0] sm:$0xff] %vm1517_vm2, %v2341_v34  ;;  %v1383_v42 = vadd.f32 %v2878_v2, %v2045_v39  ;;  %v1118_v43 = vpop.f32.mrb[61].mxu0  ;;  %2368 = vtanh.f32 %v1362_v35 }
 0x160   : > { %v2345_v37 = vpop.eup %2344  ;;  %1570 = vst.msk [vmem:[%s2589_s29 + $0x1a0] sm:$0xff] %vm1517_vm2, %v2343_v36  ;;  %v1374_v44 = vpop.f32.mrb[61].mxu1  ;;  %v1119_v46 = vadd.f32 %v2878_v2, %v1118_v43  ;;  %2370 = vtanh.f32 %v1127_v41 }
 0x161   : > { %v2347_v40 = vpop.eup %2346  ;;  %1634 = vst.msk [vmem:[%s2589_s29 + $0x3a0] sm:$0xff] %vm1517_vm2, %v2345_v37  ;;  %v1375_v47 = vadd.f32 %v2878_v2, %v1374_v44  ;;  %v1982_v48 = vpop.f32.mrb[62].mxu0  ;;  %2372 = vtanh.f32 %v1383_v42 }
 0x162   : > { %v2349_v45 = vpop.eup %2348  ;;  %1573 = vst.msk [vmem:[%s2589_s29 + $0x1b8] sm:$0xff] %vm1517_vm2, %v2347_v40  ;;  %v2046_v49 = vpop.f32.mrb[62].mxu1  ;;  %v1130_v51 = vadd.f32 %v2878_v2, %v1982_v48  ;;  %2374 = vtanh.f32 %v1119_v46 }
 0x163   : > { %v2351_v50 = vpop.eup %2350  ;;  %1637 = vst.msk [vmem:[%s2589_s29 + $0x3b8] sm:$0xff] %vm1517_vm2, %v2349_v45  ;;  %v1121_v52 = vpop.f32.mrb[63].mxu0  ;;  %v1386_v55 = vadd.f32 %v2878_v2, %v2046_v49  ;;  %2376 = vtanh.f32 %v1375_v47 }
 0x164   : > { %v1377_v53 = vpop.f32.mrb[63].mxu1  ;;  %v2353_v54 = vpop.eup %2352  ;;  %1571 = vst.msk [vmem:[%s2589_s29 + $0x1a8] sm:$0xff] %vm1517_vm2, %v2351_v50  ;;  %v1122_v57 = vadd.f32 %v2878_v2, %v1121_v52  ;;  %2378 = vtanh.f32 %v1130_v51 }
 0x165   : > { %v2355_v56 = vpop.eup %2354  ;;  %1635 = vst.msk [vmem:[%s2589_s29 + $0x3a8] sm:$0xff] %vm1517_vm2, %v2353_v54  ;;  %v1378_v59 = vadd.f32 %v2878_v2, %v1377_v53  ;;  %2380 = vtanh.f32 %v1386_v55 }
 0x166   : > { %v2357_v58 = vpop.eup %2356  ;;  %1576 = vst.msk [vmem:[%s2589_s29 + $0x1d0] sm:$0xff] %vm1517_vm2, %v2355_v56  ;;  %2382 = vtanh.f32 %v1122_v57 }
 0x167   : > { %v2359_v60 = vpop.eup %2358  ;;  %1640 = vst.msk [vmem:[%s2589_s29 + $0x3d0] sm:$0xff] %vm1517_vm2, %v2357_v58  ;;  %2384 = vtanh.f32 %v1378_v59 }
 0x168   : > { %v2361_v61 = vpop.eup %2360  ;;  %1574 = vst.msk [vmem:[%s2589_s29 + $0x1c0] sm:$0xff] %vm1517_vm2, %v2359_v60 }
 0x169   : > { %v2363_v62 = vpop.eup %2362  ;;  %1638 = vst.msk [vmem:[%s2589_s29 + $0x3c0] sm:$0xff] %vm1517_vm2, %v2361_v61 }
 0x16a   : > { %v2365_v63 = vpop.eup %2364  ;;  %1577 = vst.msk [vmem:[%s2589_s29 + $0x1d8] sm:$0xff] %vm1517_vm2, %v2363_v62 }
 0x16b   : > { %v2367_v0 = vpop.eup %2366  ;;  %1641 = vst.msk [vmem:[%s2589_s29 + $0x3d8] sm:$0xff] %vm1517_vm2, %v2365_v63 }
 0x16c   : > { %v2369_v1 = vpop.eup %2368  ;;  %1575 = vst.msk [vmem:[%s2589_s29 + $0x1c8] sm:$0xff] %vm1517_vm2, %v2367_v0 }
 0x16d   : > { %v2371_v2 = vpop.eup %2370  ;;  %1639 = vst.msk [vmem:[%s2589_s29 + $0x3c8] sm:$0xff] %vm1517_vm2, %v2369_v1 }
 0x16e   : > { %v2373_v3 = vpop.eup %2372  ;;  %1580 = vst.msk [vmem:[%s2589_s29 + $0x1f0] sm:$0xff] %vm1517_vm2, %v2371_v2 }
 0x16f   : > { %v2375_v5 = vpop.eup %2374  ;;  %1644 = vst.msk [vmem:[%s2589_s29 + $0x3f0] sm:$0xff] %vm1517_vm2, %v2373_v3 }
 0x170   : > { %v2377_v6 = vpop.eup %2376  ;;  %1578 = vst.msk [vmem:[%s2589_s29 + $0x1e0] sm:$0xff] %vm1517_vm2, %v2375_v5 }
 0x171   : > { %v2379_v7 = vpop.eup %2378  ;;  %1642 = vst.msk [vmem:[%s2589_s29 + $0x3e0] sm:$0xff] %vm1517_vm2, %v2377_v6 }
 0x172   : > { %v2381_v4 = vpop.eup %2380  ;;  %1581 = vst.msk [vmem:[%s2589_s29 + $0x1f8] sm:$0xff] %vm1517_vm2, %v2379_v7 }
 0x173   : > { %v2383_v8 = vpop.eup %2382  ;;  %1645 = vst.msk [vmem:[%s2589_s29 + $0x3f8] sm:$0xff] %vm1517_vm2, %v2381_v4 }
 0x174   : > { %v2385_v9 = vpop.eup %2384  ;;  %1579 = vst.msk [vmem:[%s2589_s29 + $0x1e8] sm:$0xff] %vm1517_vm2, %v2383_v8 }
 0x175   : > { %1643 = vst.msk [vmem:[%s2589_s29 + $0x3e8] sm:$0xff] %vm1517_vm2, %v2385_v9 }
 0x176 PF: > { %s13_s12 = sadd.s32 1, %s2393_s12  }
 0x177   : > { %p10_p4 = scmp.ge.s32.totalorder %s13_s12, 4  }
 0x179   :  { %12 = sbr.rel (!%p10_p4) target bundleno = 1 (0x1), region = 62 }

</bundles_post_ra>
